<compile_context>
chip_gen: v6e
topology: v6e:2x2x1
jax: 0.10.0
libtpu: 0.0.40
codegen_flags: <defaults>
</compile_context>

<pallas_src>
import functools

import jax
import jax.numpy as jnp
from jax.experimental import pallas as pl
from jax.experimental.pallas import tpu as pltpu

LANE = 128      # lane width (last dim)
SUBLANE = 16    # sublane granularity we round to (covers f32=8 and bf16=16)


def _round_up(x, m):
    return (x + m - 1) // m * m


def _vmem_config():
    """(vmem_limit_bytes, tile_budget_bytes, target_gemm_rows), per generation."""
    cap = 128 * 1024 * 1024
    try:
        info = pltpu.get_tpu_info()
        cap = int(getattr(info, "vmem_capacity_bytes", cap) or cap)
    except Exception:
        pass
    if cap <= 64 * 1024 * 1024:
        # v7x-class: 64 MiB VMEM per TensorCore.
        return 48 * 1024 * 1024, 26 * 1024 * 1024, 512
    # v5e / v6e: 128 MiB VMEM.
    return 96 * 1024 * 1024, 48 * 1024 * 1024, 1024


# ----------------------------- Pallas kernel ------------------------------ #
def _conv_bn_relu_kernel(x_ref, halo_ref, w_ref, bias_ref, o_ref, *,
                         K, stride, dilation, tile_oh, ow, cin,
                         halo_rows, fuse_taps, has_relu):
    """One grid step computes `tile_oh` full-width output rows of one image.

    x_ref:    (1, tile_ih, WP, Cin)  bf16  main input rows (non-overlapping).
    halo_ref: (1, halo_p, WP, Cin)   bf16  bottom halo rows for this block.
    w_ref:    (K*K*Cin, COUT_P) or (K*K, Cin, COUT_P)  bf16  BN-folded weights.
    bias_ref: (1, COUT_P)            f32   folded BN/conv bias.
    o_ref:    (1, tile_oh, OW_P, COUT_P)   bf16 lane-dense output block.
    """
    main = x_ref[0]                                   # (tile_ih, wp, cin)
    if halo_rows > 0:
        strip = jnp.concatenate([main, halo_ref[0]], axis=0)   # (sh, wp, cin)
    else:
        strip = main

    rows = tile_oh * ow

    def tap(kh, kw):
        h0 = kh * dilation
        w0 = kw * dilation
        if stride == 1:
            return strip[h0:h0 + tile_oh, w0:w0 + ow, :]
        # TODO(synk): for stride>1, pre-split the padded input into stride
        # phases host-side so these slices become unit-stride.
        return strip[h0:h0 + (tile_oh - 1) * stride + 1:stride,
                     w0:w0 + (ow - 1) * stride + 1:stride, :]

    if fuse_taps:
        # Small Cin: widen the MXU contraction to K*K*Cin with one matmul.
        cols = [tap(kh, kw) for kh in range(K) for kw in range(K)]
        xs = jnp.concatenate(cols, axis=-1).reshape(rows, K * K * cin)
        acc = jnp.dot(xs, w_ref[...], preferred_element_type=jnp.float32)
    else:
        # Large Cin: per-tap matmuls, accumulated in a local f32 value
        # (no Ref round trips between taps).
        acc = None
        idx = 0
        for kh in range(K):
            for kw in range(K):
                xs = tap(kh, kw).reshape(rows, cin)
                part = jnp.dot(xs, w_ref[idx],
                               preferred_element_type=jnp.float32)
                acc = part if acc is None else acc + part
                idx += 1

    res = acc + bias_ref[...]
    if has_relu:
        res = jnp.maximum(res, 0.0)
    # Single lane-dense store, fused cast to the (bf16) output dtype.
    o_ref[0] = res.reshape(tile_oh, ow, -1).astype(o_ref.dtype)


# -------------------------------- wrapper ---------------------------------- #
def conv_bn_relu(x, weight, gamma=None, beta=None,
                 running_mean=None, running_var=None, conv_bias=None, *,
                 stride=1, pad=1, dilation=1, groups=1, bn_eps=1e-5,
                 has_bn=True, has_relu=True, out_dtype=jnp.bfloat16):
    """x: [N, Cin, H, W] (NCHW, PyTorch layout). weight: [Cout, Cin, K, K]."""
    if groups != 1:
        # TODO(synk): grouped / depthwise conv not implemented in the Pallas path.
        raise NotImplementedError("groups != 1 is not supported")

    N, Cin, H, W = x.shape
    Cout, Cin_w, K, K2 = weight.shape
    assert Cin_w == Cin and K == K2

    OH = (H + 2 * pad - dilation * (K - 1) - 1) // stride + 1
    OW = (W + 2 * pad - dilation * (K - 1) - 1) // stride + 1

    cout_p = _round_up(Cout, LANE)          # lane-dense output channels
    # TODO(synk): for tiny Cout (e.g. 8 -> 128) pack OW*Cout onto the lane axis
    # instead of zero-padding Cout; writeback is still ~cout_p/Cout x useful bytes.
    ow_p = _round_up(OW, SUBLANE)           # sublane-friendly output width

    # ---- fold BN (inference / running stats) + conv bias into scale & bias ----
    if has_bn:
        scale = gamma / jnp.sqrt(running_var + bn_eps)
        bias = beta - running_mean * scale
        if conv_bias is not None:
            bias = bias + conv_bias * scale
    else:
        scale = jnp.ones((Cout,), jnp.float32)
        bias = conv_bias if conv_bias is not None else jnp.zeros((Cout,), jnp.float32)

    # Per-(kh,kw) weight taps with BN scale folded in; Cout padded lane-dense; bf16.
    w_taps = jnp.transpose(weight, (2, 3, 1, 0)).reshape(K * K, Cin, Cout)
    w_taps = (w_taps * scale[None, None, :]).astype(jnp.bfloat16)
    w_taps = jnp.pad(w_taps, ((0, 0), (0, 0), (0, cout_p - Cout)))
    bias_p = jnp.pad(bias.astype(jnp.float32), (0, cout_p - Cout)).reshape(1, cout_p)

    # Small-Cin layers: fuse all K*K taps into one wide contraction.
    fuse_taps = (K * K * Cin) <= 512
    w_in = w_taps.reshape(K * K * Cin, cout_p) if fuse_taps else w_taps

    # ---- padded input geometry (width) ----
    wp = max(W + 2 * pad, (ow_p - 1) * stride + dilation * (K - 1) + 1)

    out_bytes = jnp.dtype(out_dtype).itemsize
    cin_l = _round_up(Cin, LANE)            # lane padding of Cin in VMEM
    wp_s = _round_up(wp, SUBLANE)

    vmem_limit, vmem_budget, target_rows = _vmem_config()

    def _strip_h(toh):
        return (toh - 1) * stride + dilation * (K - 1) + 1

    def _vmem_bytes(toh):
        """Padding-aware per-step VMEM footprint estimate."""
        tih = toh * stride
        sh = _strip_h(toh)
        halo = max(sh - tih, 1)
        rows = toh * ow_p
        x_blk = tih * wp_s * cin_l * 2                      # bf16 main block
        h_blk = halo * wp_s * cin_l * 2                     # bf16 halo block
        o_blk = toh * ow_p * cout_p * out_bytes             # output block
        w_blk = K * K * _round_up(Cin, SUBLANE) * cout_p * 2
        b_blk = 8 * cout_p * 4
        bufs = 2 * (x_blk + h_blk + o_blk + w_blk + b_blk)  # double-buffered
        strip_v = sh * wp_s * cin_l * 2                     # in-kernel strip copy
        lhs_v = rows * (_round_up(K * K * Cin, LANE) if fuse_taps else cin_l) * 2
        acc_v = rows * cout_p * 4                           # f32 accumulator
        return bufs + strip_v + lhs_v + acc_v

    # ---- pick the output-row tile: ~target_rows GEMM rows, within VMEM budget ----
    tile_oh = max(1, min(OH, -(-target_rows // ow_p)))
    while tile_oh > 1 and _vmem_bytes(tile_oh) > vmem_budget:
        tile_oh -= 1

    tile_ih = tile_oh * stride
    sh = _strip_h(tile_oh)
    halo_rows = max(sh - tile_ih, 0)
    halo_p = max(halo_rows, 1)
    oh_blocks = -(-OH // tile_oh)
    oh_p = oh_blocks * tile_oh

    hp = max(H + 2 * pad, oh_blocks * tile_ih + halo_rows)

    # NHWC, bf16, zero-padded; read directly by the kernel (no strip stacking).
    x_nhwc = jnp.transpose(x, (0, 2, 3, 1)).astype(jnp.bfloat16)
    x_p = jnp.pad(x_nhwc, ((0, 0), (pad, hp - H - pad), (pad, wp - W - pad), (0, 0)))

    # Tiny halo array: the (K-1)*dilation+1-stride rows below each row-block.
    if halo_rows > 0:
        row_idx = (jnp.arange(1, oh_blocks + 1)[:, None] * tile_ih
                   + jnp.arange(halo_rows)[None, :])          # (oh_blocks, halo)
        halo_arr = x_p[:, row_idx].reshape(N * oh_blocks, halo_rows, wp, Cin)
    else:
        halo_arr = jnp.zeros((N * oh_blocks, halo_p, wp, Cin), jnp.bfloat16)

    kernel = functools.partial(
        _conv_bn_relu_kernel, K=K, stride=stride, dilation=dilation,
        tile_oh=tile_oh, ow=ow_p, cin=Cin, halo_rows=halo_rows,
        fuse_taps=fuse_taps, has_relu=has_relu)

    if fuse_taps:
        w_spec = pl.BlockSpec((K * K * Cin, cout_p), lambda n, b: (0, 0))
    else:
        w_spec = pl.BlockSpec((K * K, Cin, cout_p), lambda n, b: (0, 0, 0))
    # TODO(synk): single-buffer the weight/bias specs (pipeline_mode=pl.Buffered(1))
    # to save VMEM for very large Cin*Cout layers.
    # TODO(synk): for Cout >= 256 add a second "parallel" grid axis over Cout blocks.

    M = N * oh_p * ow_p
    flops = 2 * M * K * K * Cin * cout_p
    bytes_accessed = (x_p.size * 2 + halo_arr.size * 2 + w_in.size * 2
                      + bias_p.size * 4 + M * cout_p * out_bytes)

    out = pl.pallas_call(
        kernel,
        out_shape=jax.ShapeDtypeStruct((N, oh_p, ow_p, cout_p), out_dtype),
        grid=(N, oh_blocks),
        in_specs=[
            pl.BlockSpec((1, tile_ih, wp, Cin), lambda n, b: (n, b, 0, 0)),
            pl.BlockSpec((1, halo_p, wp, Cin),
                         lambda n, b: (n * oh_blocks + b, 0, 0, 0)),
            w_spec,
            pl.BlockSpec((1, cout_p), lambda n, b: (0, 0)),
        ],
        out_specs=pl.BlockSpec((1, tile_oh, ow_p, cout_p),
                               lambda n, b: (n, b, 0, 0)),
        compiler_params=pltpu.CompilerParams(
            dimension_semantics=("parallel", "parallel"),
            vmem_limit_bytes=vmem_limit),
        cost_estimate=pl.CostEstimate(
            flops=flops, transcendentals=0, bytes_accessed=bytes_accessed),
    )(x_p, halo_arr, w_in, bias_p)

    out = out[:, :OH, :OW, :Cout]
    return jnp.transpose(out, (0, 3, 1, 2))               # back to NCHW


# ------------------------------- reference --------------------------------- #
def _reference(x, weight, gamma, beta, running_mean, running_var, *,
               stride, pad, dilation, bn_eps, has_bn, has_relu):
    y = jax.lax.conv_general_dilated(
        x, weight,
        window_strides=(stride, stride),
        padding=((pad, pad), (pad, pad)),
        rhs_dilation=(dilation, dilation),
        dimension_numbers=("NCHW", "OIHW", "NCHW"))
    if has_bn:
        s = gamma / jnp.sqrt(running_var + bn_eps)
        b = beta - running_mean * s
        y = y * s[None, :, None, None] + b[None, :, None, None]
    if has_relu:
        y = jnp.maximum(y, 0.0)
    return y


if __name__ == "__main__":
    key = jax.random.PRNGKey(0)
    k1, k2, k3, k4, k5, k6 = jax.random.split(key, 6)

    # ConvBnRelu(in_planes=4, out_planes=8, ksize=3, stride=1, pad=1)
    N, Cin, H, W = 2, 4, 16, 16
    Cout, K, stride, pad, dilation = 8, 3, 1, 1, 1
    bn_eps = 1e-5

    x = jax.random.normal(k1, (N, Cin, H, W), jnp.float32)
    weight = jax.random.normal(k2, (Cout, Cin, K, K), jnp.float32) * 0.1
    gamma = 1.0 + 0.1 * jax.random.normal(k3, (Cout,), jnp.float32)
    beta = 0.1 * jax.random.normal(k4, (Cout,), jnp.float32)
    running_mean = 0.1 * jax.random.normal(k5, (Cout,), jnp.float32)
    running_var = jnp.abs(jax.random.normal(k6, (Cout,), jnp.float32)) + 0.5

    out = conv_bn_relu(x, weight, gamma, beta, running_mean, running_var,
                       stride=stride, pad=pad, dilation=dilation,
                       bn_eps=bn_eps, has_bn=True, has_relu=True)
    out = jax.block_until_ready(out)

    ref = _reference(x, weight, gamma, beta, running_mean, running_var,
                     stride=stride, pad=pad, dilation=dilation,
                     bn_eps=bn_eps, has_bn=True, has_relu=True)
    assert out.shape == (N, Cout, H, W), out.shape
    # bf16 MXU operands + bf16 output -> relaxed tolerance vs. the fp32 reference.
    err = float(jnp.max(jnp.abs(out.astype(jnp.float32) - ref)))
    assert err < 5e-2, f"max abs err {err}"

    print("KERNEL_OK")
</pallas_src>

<mosaic_0001>
module attributes {stable_mosaic.version = 11 : i64} {
  func.func @_conv_bn_relu_kernel(%arg0: i32, %arg1: i32, %arg2: memref<1x16x18x4xbf16, #tpu.memory_space<vmem>>, %arg3: memref<1x2x18x4xbf16, #tpu.memory_space<vmem>>, %arg4: memref<36x128xbf16, #tpu.memory_space<vmem>>, %arg5: memref<1x128xf32, #tpu.memory_space<vmem>>, %arg6: memref<1x16x16x128xbf16, #tpu.memory_space<vmem>>) attributes {dimension_semantics = [#tpu.dimension_semantics<parallel>, #tpu.dimension_semantics<parallel>], iteration_bounds = array<i64: 2, 1>, scalar_prefetch = 0 : i64, scratch_operands = 0 : i64, tpu.core_type = #tpu.core_type<tc>, window_params = [{transform_indices = @transform_0, window_bounds = array<i64: 1, 16, 18, 4>}, {transform_indices = @transform_1, window_bounds = array<i64: 1, 2, 18, 4>}, {pipeline_mode = #tpu.pipeline_mode<synchronous>, transform_indices = @transform_2, window_bounds = array<i64: 36, 128>}, {pipeline_mode = #tpu.pipeline_mode<synchronous>, transform_indices = @transform_3, window_bounds = array<i64: 1, 128>}, {transform_indices = @transform_4, window_bounds = array<i64: 1, 16, 16, 128>}]} {
    %c0 = arith.constant 0 : index
    %c0_0 = arith.constant 0 : index
    %c0_1 = arith.constant 0 : index
    %c0_2 = arith.constant 0 : index
    %0 = vector.load %arg2[%c0, %c0_0, %c0_1, %c0_2] : memref<1x16x18x4xbf16, #tpu.memory_space<vmem>>, vector<1x16x18x4xbf16>
    %1 = vector.shape_cast %0 : vector<1x16x18x4xbf16> to vector<16x18x4xbf16>
    %c0_3 = arith.constant 0 : index
    %c0_4 = arith.constant 0 : index
    %c0_5 = arith.constant 0 : index
    %c0_6 = arith.constant 0 : index
    %2 = vector.load %arg3[%c0_3, %c0_4, %c0_5, %c0_6] : memref<1x2x18x4xbf16, #tpu.memory_space<vmem>>, vector<1x2x18x4xbf16>
    %3 = vector.shape_cast %2 : vector<1x2x18x4xbf16> to vector<2x18x4xbf16>
    %4 = tpu.concatenate %1, %3 in 0 : vector<16x18x4xbf16>, vector<2x18x4xbf16> -> vector<18x18x4xbf16>
    %5 = vector.extract_strided_slice %4 {offsets = [0, 0, 0], sizes = [16, 16, 4], strides = [1, 1, 1]} : vector<18x18x4xbf16> to vector<16x16x4xbf16>
    %6 = vector.extract_strided_slice %4 {offsets = [0, 1, 0], sizes = [16, 16, 4], strides = [1, 1, 1]} : vector<18x18x4xbf16> to vector<16x16x4xbf16>
    %7 = vector.extract_strided_slice %4 {offsets = [0, 2, 0], sizes = [16, 16, 4], strides = [1, 1, 1]} : vector<18x18x4xbf16> to vector<16x16x4xbf16>
    %8 = vector.extract_strided_slice %4 {offsets = [1, 0, 0], sizes = [16, 16, 4], strides = [1, 1, 1]} : vector<18x18x4xbf16> to vector<16x16x4xbf16>
    %9 = vector.extract_strided_slice %4 {offsets = [1, 1, 0], sizes = [16, 16, 4], strides = [1, 1, 1]} : vector<18x18x4xbf16> to vector<16x16x4xbf16>
    %10 = vector.extract_strided_slice %4 {offsets = [1, 2, 0], sizes = [16, 16, 4], strides = [1, 1, 1]} : vector<18x18x4xbf16> to vector<16x16x4xbf16>
    %11 = vector.extract_strided_slice %4 {offsets = [2, 0, 0], sizes = [16, 16, 4], strides = [1, 1, 1]} : vector<18x18x4xbf16> to vector<16x16x4xbf16>
    %12 = vector.extract_strided_slice %4 {offsets = [2, 1, 0], sizes = [16, 16, 4], strides = [1, 1, 1]} : vector<18x18x4xbf16> to vector<16x16x4xbf16>
    %13 = vector.extract_strided_slice %4 {offsets = [2, 2, 0], sizes = [16, 16, 4], strides = [1, 1, 1]} : vector<18x18x4xbf16> to vector<16x16x4xbf16>
    %14 = tpu.concatenate %5, %6, %7, %8, %9, %10, %11, %12, %13 in 2 : vector<16x16x4xbf16>, vector<16x16x4xbf16>, vector<16x16x4xbf16>, vector<16x16x4xbf16>, vector<16x16x4xbf16>, vector<16x16x4xbf16>, vector<16x16x4xbf16>, vector<16x16x4xbf16>, vector<16x16x4xbf16> -> vector<16x16x36xbf16>
    %15 = vector.shape_cast %14 : vector<16x16x36xbf16> to vector<256x36xbf16>
    %c0_7 = arith.constant 0 : index
    %c0_8 = arith.constant 0 : index
    %16 = vector.load %arg4[%c0_7, %c0_8] : memref<36x128xbf16, #tpu.memory_space<vmem>>, vector<36x128xbf16>
    %cst = arith.constant dense<0.000000e+00> : vector<256x128xf32>
    %17 = tpu.matmul %15, %16, %cst {dimension_numbers = #tpu.dot_dimension_numbers<[1], [0], [0], [1], [0, 0, 1, 1], [], []>} : vector<256x36xbf16>, vector<36x128xbf16>, vector<256x128xf32> -> vector<256x128xf32>
    %c0_9 = arith.constant 0 : index
    %c0_10 = arith.constant 0 : index
    %18 = vector.load %arg5[%c0_9, %c0_10] : memref<1x128xf32, #tpu.memory_space<vmem>>, vector<1x128xf32>
    %19 = vector.broadcast %18 : vector<1x128xf32> to vector<256x128xf32>
    %20 = arith.addf %17, %19 : vector<256x128xf32>
    %cst_11 = arith.constant 0.000000e+00 : f32
    %21 = vector.broadcast %cst_11 : f32 to vector<256x128xf32>
    %22 = arith.maximumf %20, %21 : vector<256x128xf32>
    %23 = vector.shape_cast %22 : vector<256x128xf32> to vector<16x16x128xf32>
    %24 = arith.truncf %23 : vector<16x16x128xf32> to vector<16x16x128xbf16>
    %c0_12 = arith.constant 0 : index
    %c0_13 = arith.constant 0 : index
    %c0_14 = arith.constant 0 : index
    %c0_15 = arith.constant 0 : index
    %25 = vector.load %arg6[%c0_12, %c0_13, %c0_14, %c0_15] : memref<1x16x16x128xbf16, #tpu.memory_space<vmem>>, vector<1x16x16x128xbf16>
    %26 = vector.shape_cast %25 : vector<1x16x16x128xbf16> to vector<16x16x128xbf16>
    %27 = vector.shape_cast %24 : vector<16x16x128xbf16> to vector<1x16x16x128xbf16>
    tpu.vector_store %arg6[%c0_12, %c0_13, %c0_14, %c0_15], %27 {strides = array<i32>} : memref<1x16x16x128xbf16, #tpu.memory_space<vmem>>, vector<1x16x16x128xbf16>,
    return
  }
  func.func @transform_0(%arg0: i32, %arg1: i32) -> (i32, i32, i32, i32) {
    %c0_i32 = arith.constant 0 : i32
    %c0_i32_0 = arith.constant 0 : i32
    %c0_i32_1 = arith.constant 0 : i32
    return %arg0, %arg1, %c0_i32, %c0_i32_0 : i32, i32, i32, i32
  }
  func.func @transform_1(%arg0: i32, %arg1: i32) -> (i32, i32, i32, i32) {
    %c1_i32 = arith.constant 1 : i32
    %0 = arith.muli %arg0, %c1_i32 : i32
    %1 = arith.addi %0, %arg1 : i32
    %c0_i32 = arith.constant 0 : i32
    %c0_i32_0 = arith.constant 0 : i32
    %c0_i32_1 = arith.constant 0 : i32
    %c0_i32_2 = arith.constant 0 : i32
    return %1, %c0_i32, %c0_i32_0, %c0_i32_1 : i32, i32, i32, i32
  }
  func.func @transform_2(%arg0: i32, %arg1: i32) -> (i32, i32) {
    %c0_i32 = arith.constant 0 : i32
    %c0_i32_0 = arith.constant 0 : i32
    %c0_i32_1 = arith.constant 0 : i32
    return %c0_i32, %c0_i32_0 : i32, i32
  }
  func.func @transform_3(%arg0: i32, %arg1: i32) -> (i32, i32) {
    %c0_i32 = arith.constant 0 : i32
    %c0_i32_0 = arith.constant 0 : i32
    %c0_i32_1 = arith.constant 0 : i32
    return %c0_i32, %c0_i32_0 : i32, i32
  }
  func.func @transform_4(%arg0: i32, %arg1: i32) -> (i32, i32, i32, i32) {
    %c0_i32 = arith.constant 0 : i32
    %c0_i32_0 = arith.constant 0 : i32
    %c0_i32_1 = arith.constant 0 : i32
    return %arg0, %arg1, %c0_i32, %c0_i32_0 : i32, i32, i32, i32
  }
}

</mosaic_0001>

<bundles_post_ra>
// kernel: tpu_custom_call.1
= control target key start
LH: loop header
LB: loop body
LE: loop exit
PB: predicated region body
PF: predicated region fallthrough
CT: control target
= control target key end

     0   :  { %9 = vsyncpa [#allocation3], 0  ;;  %s3169_s0 = inlined_call_operand.vmem [shape: bf16[2,18,18,4], index: 0, kind: input, shape index: {}]   ;;  %s3170_s1 = inlined_call_operand.vmem [shape: bf16[2,2,18,4], index: 1, kind: input, shape index: {}]   ;;  %s3171_s2 = inlined_call_operand.vmem [shape: bf16[36,128], index: 2, kind: input, shape index: {}]   ;;  %s3172_s3 = inlined_call_operand.vmem [shape: f32[1,128], index: 3, kind: input, shape index: {}]   ;;  %s3173_s4 = inlined_call_operand.hbm [shape: bf16[2,16,16,128], index: 4, kind: output, shape index: {}]  }
   0x1   :  { %11 = vsyncpa [#allocation3 + $0x1], 0  ;;  %s2315_s15 = smov 0   ;;  %s2317_s16 = smov 0  }
   0x2   :  { %s2319_s17 = smov 0   ;;  %s2321_s18 = smov 0  }
   0x3   :  { %s2323_s19 = smov 0   ;;  %s2325_s20 = smov 0  }
   0x4 LB: > { %s1801_s21 = sadd.s32 4294967295, %s2278_s20   ;;  %s1802_s22 = sadd.s32 4294967294, %s2278_s20   ;;  %s2278_s20 = sphi %s2325_s20, %s17_s20   ;;  %s2274_s19 = sphi %s2323_s19, %s3180_s19   ;;  %s2270_s18 = sphi %s2321_s18, %s3179_s18   ;;  %s2266_s17 = sphi %s2319_s17, %s3178_s17   ;;  %s2262_s16 = sphi %s2317_s16, %s3177_s16   ;;  %s2258_s15 = sphi %s2315_s15, %s3176_s15  }
   0x5   : > { %s29_s23 = sadd.s32 1, %s2274_s19  ;;  %s136_s24 = sadd.s32 1, %s2266_s17 }
   0x6   : > { %p31_p0 = scmp.ge.s32.totalorder %s29_s23, 2  ;;  %p146_p1 = scmp.ne.s32.totalorder %s2266_s17, %s2262_s16 }
   0x7   : > { %p147_p2 = scmp.eq.s32.totalorder %s1801_s21, 1  ;;  %p152_p3 = scmp.ne.s32.totalorder %s2262_s16, %s2258_s15 }
   0x8   : > { %s3182_s23 = smov (%p31_p0, %s29_s23), 0  ;;  %p153_p5 = scmp.eq.s32.totalorder %s1802_s22, 1 }
   0x9   : > { %p2355_p4 = por %p147_p2, %p146_p1  ;;  %s131_s26 = ssub.s32 %s2274_s19, %s3182_s23 }
   0xa   : > { %p1805_p6 = scmp.ge.s32.totalorder %s2278_s20, 1  ;;  %p134_p7 = scmp.eq.s32.totalorder %s131_s26, 0 }
   0xb   : > { %p2362_p8 = por %p153_p5, %p152_p3  ;;  %p211_p9 = scmp.lt.s32.totalorder %s2278_s20, 3 }
   0xc   : > { %s2368_s28 = scalar_select %p134_p7, %s2266_s17, %s136_s24  }
   0xd   : > { %p212_p10 = pnand %p1805_p6, %p211_p9 }
   0xe   : > { %p259_p11 = scmp.lt.s32.totalorder (!%p212_p10), %s2270_s18, 1  ;;  %s2280_s8 = smov (!%p212_p10), 12  }
   0xf   : > { %215 = sbr.rel (%p212_p10) target bundleno = 614 (0x266), region = 36  ;;  %s2281_s9 = smov (!%p212_p10), 8  }
  0x10   : > { %s2282_s10 = smov (!%p212_p10), 4   ;;  %s2283_s11 = smov (!%p212_p10), 16  }
  0x11   : > { %s2284_s12 = smov (!%p212_p10), 20   ;;  %s2285_s13 = smov (!%p212_p10), 24  }
  0x12   : > { %s2286_s26 = smov (!%p212_p10), 28   ;;  %s2287_s6 = smov (!%p212_p10), 32  }
  0x14   : > { %s2372_s29 = scalar_select %p259_p11, %s2270_s18, 1  ;;  %vm690_vm0 = vcmask 1046528   ;;  %vm465_vm1 = vsmask.f32 7424  ;;  %vm1333_vm2 = vcmask 1041408   ;;  %vm1009_vm3 = vcmask 31744  }
  0x15   : > { %vm1042_vm4 = vcmask 64512   ;;  %vm1108_vm5 = vcmask 130048   ;;  %vm1075_vm6 = vcmask 97280   ;;  %vm1141_vm7 = vcmask 162816  }
  0x16   : > { %s2095_s30 = smul.u32 216, %s2372_s29  ;;  %vm1174_vm8 = vcmask 195584   ;;  %vm1207_vm9 = vcmask 228352   ;;  %vm1240_vm10 = vcmask 261120   ;;  %vm1300_vm11 = vcmask 293888  }
  0x17   : > { %s2096_s14 = smul.u32 24, %s2372_s29 }
  0x18   : > { %s2378_s7 = scalar_lea.vmem %s3169_s0, %s2095_s30 }
  0x19   : > { %v2381_v0 = vld [vmem:[%s2378_s7 + $0x6c] sm:$0xff]   ;;  %v2391_v2 = vld [vmem:[%s2378_s7 + $0x60] sm:$0xff]   ;;  %v2164_v3 = vld [vmem:[%s2378_s7 + $0x68] ss:$0 sps:$4 sm:$0x11]   ;;  %s2563_s24 = scalar_lea.vmem %s3170_s1, %s2096_s14  ;;  %s2288_s14 = smov [#allocation2]  }
  0x1a   : > { %v2384_v1 = vld [vmem:[%s2378_s7 + $0xc] sm:$0xff]   ;;  %792 = vrot.lane.b32.xlu1 %v2381_v0, %s2280_s8  ;;  %v2395_v4 = vld [vmem:[%s2378_s7] sm:$0xff]   ;;  %v718_v5 = vrot.slane %v2381_v0, 1  ;;  %v715_v6 = vrot.slane %v2391_v2, 1  ;;  %v716_v7 = vrot.slane %v2164_v3, 1  ;;  %v575_v26 = vshrl.u32 %v2381_v0, 16 }
  0x1b   : > { %776 = vrot.lane.b32.xlu0 %v2384_v1, %s2280_s8  ;;  %v2166_v8 = vld [vmem:[%s2378_s7 + $0x8] ss:$0 sps:$4 sm:$0x11]   ;;  %v694_v9 = vrot.slane %v2384_v1, 1  ;;  %v691_v10 = vrot.slane %v2395_v4, 1  ;;  %v479_v16 = vshrl.u32 %v2384_v1, 16 }
  0x1c   : > { %v2167_v11 = vld [vmem:[%s2378_s7 + $0x74] ss:$0 sps:$4 sm:$0x11]   ;;  %v2404_v12 = vsel %vm690_vm0, %v715_v6, %v716_v7  ;;  %v692_v13 = vrot.slane %v2166_v8, 1  ;;  %v481_v17 = vshll.u32 %v2384_v1, 16  ;;  %v467_v18 = vshrl.u32 %v2395_v4, 16 }
  0x1d   : > { %v2168_v14 = vld [vmem:[%s2378_s7 + $0x14] ss:$0 sps:$4 sm:$0x11]   ;;  %v719_v15 = vrot.slane %v2167_v11, 1  ;;  %v469_v22 = vshll.u32 %v2395_v4, 16  ;;  %v474_v25 = vshll.u32 %v2166_v8, 16 }
  0x1e   : > { %755 = vrot.lane.b32.xlu1 %v2404_v12, %s2281_s9  ;;  %v693_v19 = vsel %vm690_vm0, %v691_v10, %v692_v13  ;;  %v695_v20 = vrot.slane %v2168_v14, 1  ;;  %v486_v21 = vshll.u32 %v2168_v14, 16  ;;  %v483_v24 = vrot.slane %v481_v17, 1  ;;  %v2426_v39 = vld [vmem:[%s2378_s7 + $0x78] sm:$0xff]   ;;  %v2484_v14 = vld [vmem:[%s2378_s7 + $0x24] sm:$0xff]   ;;  %s2206_s21 = sshll.u32 %s2288_s14, 4  ;;  %s2207_s21 = int_to_ptr.vmem [resolvable:$false] %s2206_s21 }
  0x1f   : > { %739 = vrot.lane.b32.xlu0 %v693_v19, %s2281_s9  ;;  %v2416_v23 = vsel %vm690_vm0, %v718_v5, %v719_v15  ;;  %v471_v29 = vrot.slane %v469_v22, 1  ;;  %v577_v30 = vshll.u32 %v2381_v0, 16  ;;  %v476_v32 = vrot.slane %v474_v25, 1  ;;  %v2432_v46 = vld [vmem:[%s2378_s7 + $0x18] sm:$0xff]   ;;  %s2208_s22 = scalar_lea.vmem %s2207_s21, 4096 }
  0x20   : > { %v696_v27 = vsel %vm690_vm0, %v694_v9, %v695_v20  ;;  %v488_v28 = vrot.slane %v486_v21, 1  ;;  %v484_v31 = vor.u32 %v483_v24, %v479_v16  ;;  %v582_v33 = vshll.u32 %v2167_v11, 16  ;;  %v2171_v47 = vld [vmem:[%s2378_s7 + $0x80] ss:$0 sps:$4 sm:$0x11]   ;;  %v2477_v11 = vld [vmem:[%s2378_s7 + $0x84] sm:$0xff]  }
  0x21   : > { %v563_v34 = vshrl.u32 %v2391_v2, 16  ;;  %v472_v35 = vor.u32 %v471_v29, %v467_v18  ;;  %v579_v36 = vrot.slane %v577_v30, 1  ;;  %v565_v37 = vshll.u32 %v2391_v2, 16  ;;  %v2172_v52 = vld [vmem:[%s2378_s7 + $0x20] ss:$0 sps:$4 sm:$0x11]  }
  0x22   : > { %757 = vrot.lane.b32.xlu1 %v2416_v23, %s2281_s9  ;;  %v570_v38 = vshll.u32 %v2164_v3, 16  ;;  %v489_v40 = vsel %vm465_vm1, %v484_v31, %v488_v28  ;;  %v584_v41 = vrot.slane %v582_v33, 1  ;;  %v589_v50 = vshll.u32 %v2426_v39, 16  ;;  %v2175_v15 = vld [vmem:[%s2378_s7 + $0x8c] ss:$0 sps:$4 sm:$0x11]  }
  0x23   : > { %741 = vrot.lane.b32.xlu0 %v696_v27, %s2281_s9  ;;  %v477_v42 = vsel %vm465_vm1, %v472_v35, %v476_v32  ;;  %v580_v43 = vor.u32 %v579_v36, %v575_v26  ;;  %v567_v44 = vrot.slane %v565_v37, 1  ;;  %v493_v53 = vshll.u32 %v2432_v46, 16  ;;  %v2176_v17 = vld [vmem:[%s2378_s7 + $0x2c] ss:$0 sps:$4 sm:$0x11]   ;;  %v2193_v33 = vld [vmem:[%s3171_s2] sm:$0xff]  }
  0x24   : > { %v572_v45 = vrot.slane %v570_v38, 1  ;;  %v587_v54 = vshrl.u32 %v2426_v39, 16  ;;  %v591_v55 = vrot.slane %v589_v50, 1  ;;  %v594_v56 = vshll.u32 %v2171_v47, 16  ;;  %v2190_v28 = vld [vmem:[%s3171_s2 + $0x8] sm:$0xff]  }
  0x25   : > { %v2437_v48 = vsel %vm465_vm1, %v580_v43, %v584_v41  ;;  %v568_v49 = vor.u32 %v567_v44, %v563_v34  ;;  %v491_v57 = vshrl.u32 %v2432_v46, 16  ;;  %v495_v58 = vrot.slane %v493_v53, 1  ;;  %v2189_v19 = vld [vmem:[%s3171_s2 + $0x10] ss:$0 sps:$4 sm:$0x33]  }
  0x26   : > { %660 = vrot.lane.b32.xlu1 %v489_v40, %s2282_s10  ;;  %v498_v59 = vshll.u32 %v2172_v52, 16  ;;  %v592_v60 = vor.u32 %v591_v55, %v587_v54  ;;  %v596_v61 = vrot.slane %v594_v56, 1  ;;  %v721_v6 = vrot.slane %v2426_v39, 1  ;;  %2093 = vmatprep.subr.msk.bf16.mxu0 %vm1333_vm2, %v2189_v19  ;;  %v2540_v43 = vld [vmem:[%s2378_s7 + $0x90] sm:$0xff]  }
  0x27   : > { %658 = vrot.lane.b32.xlu0 %v477_v42, %s2282_s10  ;;  %v2442_v51 = vsel %vm465_vm1, %v568_v49, %v572_v45  ;;  %v496_v62 = vor.u32 %v495_v58, %v491_v57  ;;  %v722_v7 = vrot.slane %v2171_v47, 1  ;;  %v697_v8 = vrot.slane %v2432_v46, 1  ;;  %2094 = vmatprep.subr.msk.bf16.mxu1 %vm1333_vm2, %v2189_v19  ;;  %v2545_v44 = vld [vmem:[%s2378_s7 + $0x30] sm:$0xff]   ;;  %v2179_v45 = vld [vmem:[%s2378_s7 + $0x98] ss:$0 sps:$4 sm:$0x11]  }
  0x28   : > { %v500_v63 = vrot.slane %v498_v59, 1  ;;  %v2459_v3 = vsel %vm465_vm1, %v592_v60, %v596_v61  ;;  %v698_v9 = vrot.slane %v2172_v52, 1  ;;  %v601_v16 = vshll.u32 %v2477_v11, 16  ;;  %v2180_v49 = vld [vmem:[%s2378_s7 + $0x38] ss:$0 sps:$4 sm:$0x11]  }
  0x29   : > { %v2474_v10 = vsel %vm690_vm0, %v721_v6, %v722_v7  ;;  %v505_v18 = vshll.u32 %v2484_v14, 16  ;;  %v599_v20 = vshrl.u32 %v2477_v11, 16  ;;  %v606_v22 = vshll.u32 %v2175_v15, 16 }
  0x2a   : > { %676 = vrot.lane.b32.xlu1 %v2437_v48, %s2282_s10  ;;  %v2463_v5 = vsel %vm465_vm1, %v496_v62, %v500_v63  ;;  %v2481_v13 = vsel %vm690_vm0, %v697_v8, %v698_v9  ;;  %v603_v21 = vrot.slane %v601_v16, 1  ;;  %v1335_v24 = vsel %vm1333_vm2, %v2189_v19, 0  ;;  %v2580_v9 = vld [vmem:[%s2378_s7 + $0x9c] sm:$0xff]  }
  0x2b   : > { %674 = vrot.lane.b32.xlu0 %v2442_v51, %s2282_s10  ;;  %v503_v25 = vshrl.u32 %v2484_v14, 16  ;;  %v507_v26 = vrot.slane %v505_v18, 1  ;;  %2050 = vmatpush3.bf16.msra.mxu0 %v1335_v24  ;;  %v608_v30 = vrot.slane %v606_v22, 1  ;;  %v724_v36 = vrot.slane %v2477_v11, 1 }
  0x2c   : > { %2090 = vmatpush3.bf16.msra.mxu1 %v1335_v24  ;;  %v604_v29 = vor.u32 %v603_v21, %v599_v20  ;;  %2051 = vmatprep.subr.bf16.mxu0 %v2190_v28  ;;  %v725_v37 = vrot.slane %v2175_v15, 1  ;;  %v700_v38 = vrot.slane %v2484_v14, 1  ;;  %v613_v47 = vshll.u32 %v2540_v43, 16  ;;  %v2183_v15 = vld [vmem:[%s2378_s7 + $0xa4] ss:$0 sps:$4 sm:$0x11]  }
  0x2d   : > { %v508_v31 = vor.u32 %v507_v26, %v503_v25  ;;  %2088 = vmatprep.subr.bf16.mxu1 %v2190_v28  ;;  %v517_v50 = vshll.u32 %v2545_v44, 16  ;;  %v618_v52 = vshll.u32 %v2179_v45, 16  ;;  %v611_v53 = vshrl.u32 %v2540_v43, 16 }
  0x2e   : > { %794 = vrot.lane.b32.xlu1 %v2426_v39, %s2280_s8  ;;  %v609_v34 = vsel %vm465_vm1, %v604_v29, %v608_v30  ;;  %v726_v41 = vsel %vm690_vm0, %v724_v36, %v725_v37  ;;  %v615_v54 = vrot.slane %v613_v47, 1  ;;  %v515_v55 = vshrl.u32 %v2545_v44, 16 }
  0x2f   : > { %778 = vrot.lane.b32.xlu0 %v2432_v46, %s2280_s8  ;;  %2052 = vmatpush3.bf16.msra.mxu0 %v2190_v28  ;;  %v519_v56 = vrot.slane %v517_v50, 1  ;;  %v522_v57 = vshll.u32 %v2180_v49, 16  ;;  %v620_v58 = vrot.slane %v618_v52, 1  ;;  %v703_v6 = vrot.slane %v2545_v44, 1 }
  0x30   : > { %2091 = vmatpush3.bf16.msra.mxu1 %v2190_v28  ;;  %2053 = vmatprep.subr.bf16.mxu0 %v2193_v33  ;;  %v616_v59 = vor.u32 %v615_v54, %v611_v53  ;;  %v704_v7 = vrot.slane %v2180_v49, 1  ;;  %v625_v16 = vshll.u32 %v2580_v9, 16  ;;  %v623_v19 = vshrl.u32 %v2580_v9, 16 }
  0x31   : > { %2089 = vmatprep.subr.bf16.mxu1 %v2193_v33  ;;  %v520_v60 = vor.u32 %v519_v56, %v515_v55  ;;  %v524_v61 = vrot.slane %v522_v57, 1  ;;  %v630_v21 = vshll.u32 %v2183_v15, 16  ;;  %v730_v36 = vrot.slane %v2580_v9, 1  ;;  %v2646_v56 = vld [vmem:[%s2378_s7 + $0xa8] sm:$0xff]  }
  0x32   : > { %839 = vrot.lane.b32.xlu1 %v2437_v48, %s2283_s11  ;;  %v621_v62 = vsel %vm465_vm1, %v616_v59, %v620_v58  ;;  %v627_v20 = vrot.slane %v625_v16, 1  ;;  %v731_v37 = vrot.slane %v2183_v15, 1  ;;  %v2652_v58 = vld [vmem:[%s2378_s7 + $0x48] sm:$0xff]  }
  0x33   : > { %823 = vrot.lane.b32.xlu0 %v489_v40, %s2283_s11  ;;  %2054 = vmatpush3.bf16.msra.mxu0 %v2193_v33  ;;  %v701_v40 = vrot.slane %v2176_v17, 1  ;;  %v525_v63 = vsel %vm465_vm1, %v520_v60, %v524_v61  ;;  %v2187_v60 = vld [vmem:[%s2378_s7 + $0xb0] ss:$0 sps:$4 sm:$0x11]   ;;  %v637_v61 = vshll.u32 %v2646_v56, 16  ;;  %v539_v15 = vshrl.u32 %v2652_v58, 16 }
  0x34   : > { %2092 = vmatpush3.bf16.msra.mxu1 %v2193_v33  ;;  %v628_v26 = vor.u32 %v627_v20, %v623_v19 }
  0x35   : > { %v702_v42 = vsel %vm690_vm0, %v700_v38, %v701_v40 }
  0x36   : > { %841 = vrot.lane.b32.xlu1 %v2459_v3, %s2283_s11 }
  0x37   : > { %825 = vrot.lane.b32.xlu0 %v2463_v5, %s2283_s11 }
  0x3a   : > { %874 = vrot.lane.b32.xlu1 %v2416_v23, %s2284_s12 }
  0x3b   : > { %858 = vrot.lane.b32.xlu0 %v696_v27, %s2284_s12  ;;  %v510_v27 = vshll.u32 %v2176_v17, 16  ;;  %v2184_v17 = vld [vmem:[%s2378_s7 + $0x44] ss:$0 sps:$4 sm:$0x11]  }
  0x3c   : > { %v534_v25 = vshll.u32 %v2184_v17, 16 }
  0x3d   : > { %v512_v32 = vrot.slane %v510_v27, 1  ;;  %v632_v27 = vrot.slane %v630_v21, 1 }
  0x3e   : > { %876 = vrot.lane.b32.xlu1 %v2474_v10, %s2284_s12  ;;  %v536_v29 = vrot.slane %v534_v25, 1 }
  0x3f   : > { %860 = vrot.lane.b32.xlu0 %v2481_v13, %s2284_s12  ;;  %v513_v35 = vsel %vm465_vm1, %v508_v31, %v512_v32  ;;  %v633_v31 = vsel %vm465_vm1, %v628_v26, %v632_v27 }
  0x42   : > { %911 = vrot.lane.b32.xlu1 %v2426_v39, %s2285_s13 }
  0x43   : > { %895 = vrot.lane.b32.xlu0 %v2432_v46, %s2285_s13 }
  0x46   : > { %913 = vrot.lane.b32.xlu1 %v2477_v11, %s2285_s13 }
  0x47   : > { %897 = vrot.lane.b32.xlu0 %v2484_v14, %s2285_s13 }
  0x4a   : > { %958 = vrot.lane.b32.xlu1 %v2459_v3, %s2286_s26 }
  0x4b   : > { %942 = vrot.lane.b32.xlu0 %v2463_v5, %s2286_s26 }
  0x4e   : > { %960 = vrot.lane.b32.xlu1 %v609_v34, %s2286_s26 }
  0x4f   : > { %944 = vrot.lane.b32.xlu0 %v513_v35, %s2286_s26 }
  0x52   : > { %993 = vrot.lane.b32.xlu1 %v2474_v10, %s2287_s6 }
  0x53   : > { %977 = vrot.lane.b32.xlu0 %v2481_v13, %s2287_s6 }
  0x56   : > { %678 = vrot.lane.b32.xlu1 %v2459_v3, %s2282_s10  ;;  %v727_v3 = vrot.slane %v2540_v43, 1 }
  0x57   : > { %662 = vrot.lane.b32.xlu0 %v2463_v5, %s2282_s10  ;;  %v728_v5 = vrot.slane %v2179_v45, 1  ;;  %v732_v45 = vsel %vm690_vm0, %v730_v36, %v731_v37  ;;  %v733_v36 = vrot.slane %v2646_v56, 1  ;;  %v734_v37 = vrot.slane %v2187_v60, 1 }
  0x59   : > { %v729_v8 = vsel %vm690_vm0, %v727_v3, %v728_v5  ;;  %v541_v3 = vshll.u32 %v2652_v58, 16 }
  0x5a   : > { %995 = vrot.lane.b32.xlu1 %v726_v41, %s2287_s6 }
  0x5b   : > { %979 = vrot.lane.b32.xlu0 %v702_v42, %s2287_s6  ;;  %v543_v16 = vrot.slane %v541_v3, 1  ;;  %v2708_v3 = vld [vmem:[%s2378_s7 + $0xb4] sm:$0xff]  }
  0x5e   : > { %680 = vrot.lane.b32.xlu1 %v609_v34, %s2282_s10 }
  0x5f   : > { %664 = vrot.lane.b32.xlu0 %v513_v35, %s2282_s10 }
  0x62   : > { %759 = vrot.lane.b32.xlu1 %v2474_v10, %s2281_s9  ;;  %v705_v10 = vsel %vm690_vm0, %v703_v6, %v704_v7  ;;  %v635_v6 = vshrl.u32 %v2646_v56, 16  ;;  %v639_v7 = vrot.slane %v637_v61, 1 }
  0x63   : > { %743 = vrot.lane.b32.xlu0 %v2481_v13, %s2281_s9  ;;  %v2585_v13 = vld [vmem:[%s2378_s7 + $0x3c] sm:$0xff]  }
  0x64   : > { %v529_v18 = vshll.u32 %v2585_v13, 16  ;;  %v527_v22 = vshrl.u32 %v2585_v13, 16  ;;  %v706_v40 = vrot.slane %v2585_v13, 1  ;;  %v640_v19 = vor.u32 %v639_v7, %v635_v6 }
  0x66   : > { %761 = vrot.lane.b32.xlu1 %v726_v41, %s2281_s9  ;;  %v531_v24 = vrot.slane %v529_v18, 1 }
  0x67   : > { %745 = vrot.lane.b32.xlu0 %v702_v42, %s2281_s9 }
  0x68   : > { %v532_v28 = vor.u32 %v531_v24, %v527_v22  ;;  %v544_v22 = vor.u32 %v543_v16, %v539_v15 }
  0x6a   : > { %796 = vrot.lane.b32.xlu1 %v2477_v11, %s2280_s8  ;;  %v537_v33 = vsel %vm465_vm1, %v532_v28, %v536_v29 }
  0x6b   : > { %780 = vrot.lane.b32.xlu0 %v2484_v14, %s2280_s8 }
  0x6e   : > { %798 = vrot.lane.b32.xlu1 %v2540_v43, %s2280_s8 }
  0x6f   : > { %782 = vrot.lane.b32.xlu0 %v2545_v44, %s2280_s8 }
  0x72   : > { %843 = vrot.lane.b32.xlu1 %v609_v34, %s2283_s11 }
  0x73   : > { %827 = vrot.lane.b32.xlu0 %v513_v35, %s2283_s11 }
  0x76   : > { %845 = vrot.lane.b32.xlu1 %v621_v62, %s2283_s11 }
  0x77   : > { %829 = vrot.lane.b32.xlu0 %v525_v63, %s2283_s11 }
  0x7a   : > { %878 = vrot.lane.b32.xlu1 %v726_v41, %s2284_s12  ;;  %v707_v41 = vrot.slane %v2184_v17, 1 }
  0x7b   : > { %862 = vrot.lane.b32.xlu0 %v702_v42, %s2284_s12 }
  0x7c   : > { %v2631_v49 = vsel %vm690_vm0, %v706_v40, %v707_v41 }
  0x7e   : > { %880 = vrot.lane.b32.xlu1 %v729_v8, %s2284_s12 }
  0x7f   : > { %864 = vrot.lane.b32.xlu0 %v705_v10, %s2284_s12 }
  0x82   : > { %915 = vrot.lane.b32.xlu1 %v2540_v43, %s2285_s13 }
  0x83   : > { %899 = vrot.lane.b32.xlu0 %v2545_v44, %s2285_s13 }
  0x86   : > { %917 = vrot.lane.b32.xlu1 %v2580_v9, %s2285_s13 }
  0x87   : > { %901 = vrot.lane.b32.xlu0 %v2585_v13, %s2285_s13 }
  0x8a   : > { %962 = vrot.lane.b32.xlu1 %v621_v62, %s2286_s26 }
  0x8b   : > { %946 = vrot.lane.b32.xlu0 %v525_v63, %s2286_s26 }
  0x8c   : > { %v2604_v30 = vpop.permute.xlu1 %792 }
  0x8d   : > { %v2608_v32 = vpop.permute.xlu0 %776 }
  0x8e   : > { %964 = vrot.lane.b32.xlu1 %v633_v31, %s2286_s26 }
  0x8f   : > { %948 = vrot.lane.b32.xlu0 %v537_v33, %s2286_s26 }
  0x90   : > { %v2613_v34 = vpop.permute.xlu1 %755 }
  0x91   : > { %v2615_v35 = vpop.permute.xlu0 %739 }
  0x92   : > { %997 = vrot.lane.b32.xlu1 %v729_v8, %s2287_s6 }
  0x93   : > { %981 = vrot.lane.b32.xlu0 %v705_v10, %s2287_s6 }
  0x94   : > { %v2620_v38 = vpop.permute.xlu1 %757 }
  0x95   : > { %v2623_v42 = vpop.permute.xlu0 %741 }
  0x96   : > { %682 = vrot.lane.b32.xlu1 %v621_v62, %s2282_s10 }
  0x97   : > { %666 = vrot.lane.b32.xlu0 %v525_v63, %s2282_s10  ;;  %v2188_v63 = vld [vmem:[%s2378_s7 + $0x50] ss:$0 sps:$4 sm:$0x11]  }
  0x98   : > { %v2628_v47 = vpop.permute.xlu1 %660  ;;  %v546_v17 = vshll.u32 %v2188_v63, 16  ;;  %v710_v40 = vrot.slane %v2188_v63, 1 }
  0x99   : > { %v659_v50 = vpop.permute.xlu0 %658 }
  0x9a   : > { %999 = vrot.lane.b32.xlu1 %v732_v45, %s2287_s6  ;;  %v548_v24 = vrot.slane %v546_v17, 1  ;;  %v1011_v6 = vsel %vm1009_vm3, %v2395_v4, %v659_v50 }
  0x9b   : > { %983 = vrot.lane.b32.xlu0 %v2631_v49, %s2287_s6  ;;  %v1044_v4 = vsel %vm1042_vm4, %v1011_v6, %v2615_v35  ;;  %v2737_v35 = vld [vmem:[%s2378_s7 + $0x5c] ss:$0 sps:$4 sm:$0x11]  }
  0x9c   : > { %v2636_v52 = vpop.permute.xlu1 %676  ;;  %v2689_v28 = vsel %vm465_vm1, %v544_v22, %v548_v24  ;;  %v647_v22 = vshrl.u32 %v2708_v3, 16 }
  0x9d   : > { %v675_v53 = vpop.permute.xlu0 %674 }
  0x9e   : > { %684 = vrot.lane.b32.xlu1 %v633_v31, %s2282_s10  ;;  %v1027_v41 = vsel %vm1009_vm3, %v2391_v2, %v675_v53 }
  0x9f   : > { %668 = vrot.lane.b32.xlu0 %v537_v33, %s2282_s10  ;;  %v1060_v53 = vsel %vm1042_vm4, %v1027_v41, %v2613_v34  ;;  %v649_v34 = vshll.u32 %v2708_v3, 16 }
  0xa0   : > { %v2640_v54 = vpop.permute.xlu1 %794  ;;  %v1093_v50 = vsel %vm1075_vm6, %v1060_v53, %v2604_v30  ;;  %v558_v53 = vshll.u32 %v2737_v35, 16 }
  0xa1   : > { %v2642_v55 = vpop.permute.xlu0 %778 }
  0xa2   : > { %763 = vrot.lane.b32.xlu1 %v729_v8, %s2281_s9  ;;  %v642_v8 = vshll.u32 %v2187_v60, 16  ;;  %v2705_v60 = vsel %vm690_vm0, %v733_v36, %v734_v37  ;;  %v651_v36 = vrot.slane %v649_v34, 1 }
  0xa3   : > { %747 = vrot.lane.b32.xlu0 %v705_v10, %s2281_s9 }
  0xa4   : > { %v2649_v57 = vpop.permute.xlu1 %839  ;;  %v644_v20 = vrot.slane %v642_v8, 1 }
  0xa5   : > { %v2654_v59 = vpop.permute.xlu0 %823  ;;  %v1126_v16 = vsel %vm1108_vm5, %v1093_v50, %v2649_v57 }
  0xa6   : > { %765 = vrot.lane.b32.xlu1 %v732_v45, %s2281_s9  ;;  %v2685_v26 = vsel %vm465_vm1, %v640_v19, %v644_v20  ;;  %v1077_v19 = vsel %vm1075_vm6, %v1044_v4, %v2608_v32  ;;  %v1029_v32 = vsel %vm1009_vm3, %v2381_v0, %v2636_v52  ;;  %v1013_v0 = vsel %vm1009_vm3, %v2384_v1, %v2628_v47 }
  0xa7   : > { %749 = vrot.lane.b32.xlu0 %v2631_v49, %s2281_s9  ;;  %v1110_v57 = vsel %vm1108_vm5, %v1077_v19, %v2654_v59  ;;  %v652_v4 = vor.u32 %v651_v36, %v647_v22  ;;  %v1046_v47 = vsel %vm1042_vm4, %v1013_v0, %v2623_v42 }
  0xa8   : > { %v2661_v62 = vpop.permute.xlu1 %841 }
  0xa9   : > { %v2665_v5 = vpop.permute.xlu0 %825 }
  0xaa   : > { %800 = vrot.lane.b32.xlu1 %v2580_v9, %s2280_s8 }
  0xab   : > { %784 = vrot.lane.b32.xlu0 %v2585_v13, %s2280_s8 }
  0xac   : > { %v875_v10 = vpop.permute.xlu1 %874 }
  0xad   : > { %v2673_v18 = vpop.permute.xlu0 %858  ;;  %v1159_v20 = vsel %vm1141_vm7, %v1126_v16, %v875_v10  ;;  %v560_v16 = vrot.slane %v558_v53, 1  ;;  %v2196_v53 = vld [vmem:[%s2563_s24] sm:$0xff]  }
  0xae   : > { %802 = vrot.lane.b32.xlu1 %v2646_v56, %s2280_s8  ;;  %v1143_v10 = vsel %vm1141_vm7, %v1110_v57, %v2673_v18 }
  0xaf   : > { %786 = vrot.lane.b32.xlu0 %v2652_v58, %s2280_s8 }
  0xb0   : > { %v2679_v21 = vpop.permute.xlu1 %876 }
  0xb1   : > { %v2681_v25 = vpop.permute.xlu0 %860 }
  0xb2   : > { %847 = vrot.lane.b32.xlu1 %v633_v31, %s2283_s11 }
  0xb3   : > { %831 = vrot.lane.b32.xlu0 %v537_v33, %s2283_s11  ;;  %v709_v33 = vrot.slane %v2652_v58, 1 }
  0xb4   : > { %v912_v27 = vpop.permute.xlu1 %911 }
  0xb5   : > { %v896_v29 = vpop.permute.xlu0 %895  ;;  %v2717_v7 = vsel %vm690_vm0, %v709_v33, %v710_v40  ;;  %v1192_v24 = vsel %vm1174_vm8, %v1159_v20, %v912_v27 }
  0xb6   : > { %849 = vrot.lane.b32.xlu1 %v2685_v26, %s2283_s11  ;;  %v1176_v27 = vsel %vm1174_vm8, %v1143_v10, %v896_v29  ;;  %v1062_v29 = vsel %vm1042_vm4, %v1029_v32, %v2620_v38 }
  0xb7   : > { %833 = vrot.lane.b32.xlu0 %v2689_v28, %s2283_s11  ;;  %v1095_v50 = vsel %vm1075_vm6, %v1062_v29, %v2640_v54  ;;  %v814_v29 = vshll.u32 %v2196_v53, 16 }
  0xb8   : > { %v2696_v31 = vpop.permute.xlu1 %913  ;;  %v1128_v38 = vsel %vm1108_vm5, %v1095_v50, %v2661_v62 }
  0xb9   : > { %v2701_v61 = vpop.permute.xlu0 %897  ;;  %v1161_v54 = vsel %vm1141_vm7, %v1128_v38, %v2679_v21 }
  0xba   : > { %882 = vrot.lane.b32.xlu1 %v732_v45, %s2284_s12  ;;  %v2720_v45 = vld [vmem:[%s2378_s7 + $0x54] sm:$0xff]   ;;  %v1194_v42 = vsel %vm1174_vm8, %v1161_v54, %v2696_v31 }
  0xbb   : > { %866 = vrot.lane.b32.xlu0 %v2631_v49, %s2284_s12  ;;  %v2727_v49 = vld [vmem:[%s2378_s7 + $0xbc] ss:$0 sps:$4 sm:$0x11]   ;;  %v553_v17 = vshll.u32 %v2720_v45, 16  ;;  %v551_v59 = vshrl.u32 %v2720_v45, 16  ;;  %v712_v10 = vrot.slane %v2720_v45, 1 }
  0xbc   : > { %v959_v63 = vpop.permute.xlu1 %958  ;;  %v654_v37 = vshll.u32 %v2727_v49, 16 }
  0xbd   : > { %v943_v8 = vpop.permute.xlu0 %942  ;;  %v1225_v33 = vsel %vm1207_vm9, %v1192_v24, %v959_v63  ;;  %v555_v6 = vrot.slane %v553_v17, 1  ;;  %v1079_v17 = vsel %vm1075_vm6, %v1046_v47, %v2642_v55 }
  0xbe   : > { %884 = vrot.lane.b32.xlu1 %v2705_v60, %s2284_s12  ;;  %v1209_v52 = vsel %vm1207_vm9, %v1176_v27, %v943_v8  ;;  %v656_v34 = vrot.slane %v654_v37, 1  ;;  %v1112_v20 = vsel %vm1108_vm5, %v1079_v17, %v2665_v5  ;;  %v737_v37 = vrot.slane %v2727_v49, 1 }
  0xbf   : > { %868 = vrot.lane.b32.xlu0 %v2717_v7, %s2284_s12  ;;  %v556_v8 = vor.u32 %v555_v6, %v551_v59  ;;  %v1145_v22 = vsel %vm1141_vm7, %v1112_v20, %v2681_v25 }
  0xc0   : > { %v961_v15 = vpop.permute.xlu1 %960  ;;  %v657_v62 = vsel %vm465_vm1, %v652_v4, %v656_v34  ;;  %v1178_v57 = vsel %vm1174_vm8, %v1145_v22, %v2701_v61  ;;  %v816_v34 = vrot.slane %v814_v29, 1  ;;  %v855_v22 = vrot.slane %v2196_v53, 1 }
  0xc1   : > { %v945_v30 = vpop.permute.xlu0 %944  ;;  %v1227_v55 = vsel %vm1207_vm9, %v1194_v42, %v961_v15  ;;  %v561_v5 = vsel %vm465_vm1, %v556_v8, %v560_v16 }
  0xc2   : > { %919 = vrot.lane.b32.xlu1 %v2646_v56, %s2285_s13  ;;  %v1211_v31 = vsel %vm1207_vm9, %v1178_v57, %v945_v30  ;;  %v736_v30 = vrot.slane %v2708_v3, 1  ;;  %v2882_v57 = vld [vmem:[%s2563_s24 + $0xc] sm:$0xff]  }
  0xc3   : > { %903 = vrot.lane.b32.xlu0 %v2652_v58, %s2285_s13 }
  0xc4   : > { %v994_v40 = vpop.permute.xlu1 %993  ;;  %v738_v59 = vsel %vm690_vm0, %v736_v30, %v737_v37  ;;  %v933_v30 = vshll.u32 %v2882_v57, 16 }
  0xc5   : > { %v1258_v41 = vsel %vm1240_vm10, %v1225_v33, %v994_v40  ;;  %v978_v18 = vpop.permute.xlu0 %977  ;;  %v713_v33 = vrot.slane %v2737_v35, 1 }
  0xc6   : > { %921 = vrot.lane.b32.xlu1 %v2708_v3, %s2285_s13  ;;  %2071 = vmatprep.mubr.msk.bf16.mxu1 %vm1300_vm11, %v1258_v41  ;;  %v1242_v63 = vsel %vm1240_vm10, %v1209_v52, %v978_v18  ;;  %v2197_v18 = vld [vmem:[%s2563_s24 + $0x8] ss:$0 sps:$4 sm:$0x11]  }
  0xc7   : > { %905 = vrot.lane.b32.xlu0 %v2720_v45, %s2285_s13  ;;  %2055 = vmatprep.mubr.msk.bf16.mxu0 %vm1300_vm11, %v1242_v63  ;;  %v714_v27 = vsel %vm690_vm0, %v712_v10, %v713_v33  ;;  %v819_v50 = vshll.u32 %v2197_v18, 16 }
  0xc8   : > { %v2777_v1 = vpop.permute.xlu1 %678 }
  0xc9   : > { %v2787_v19 = vpop.permute.xlu0 %662  ;;  %v821_v8 = vrot.slane %v819_v50, 1 }
  0xca   : > { %966 = vrot.lane.b32.xlu1 %v2685_v26, %s2286_s26  ;;  %v1015_v37 = vsel %vm1009_vm3, %v2432_v46, %v2787_v19  ;;  %v931_v46 = vshrl.u32 %v2882_v57, 16 }
  0xcb   : > { %950 = vrot.lane.b32.xlu0 %v2689_v28, %s2286_s26 }
  0xcc   : > { %v996_v21 = vpop.permute.xlu1 %995 }
  0xcd   : > { %v1260_v24 = vsel %vm1240_vm10, %v1227_v55, %v996_v21  ;;  %v980_v36 = vpop.permute.xlu0 %979 }
  0xce   : > { %968 = vrot.lane.b32.xlu1 %v657_v62, %s2286_s26  ;;  %2072 = vmatmul.mubr.msk.bf16.vlgmr.msra.gmra.mxu1 %vm1300_vm11, %v1260_v24  ;;  %v1244_v25 = vsel %vm1240_vm10, %v1211_v31, %v980_v36 }
  0xcf   : > { %952 = vrot.lane.b32.xlu0 %v561_v5, %s2286_s26  ;;  %2056 = vmatmul.mubr.msk.bf16.vlgmr.msra.gmra.mxu0 %vm1300_vm11, %v1244_v25  ;;  %v2892_v25 = vld [vmem:[%s2563_s24 + $0x14] ss:$0 sps:$4 sm:$0x11]  }
  0xd0   : > { %v2811_v15 = vpop.permute.xlu1 %680  ;;  %v938_v29 = vshll.u32 %v2892_v25, 16 }
  0xd1   : > { %v2813_v61 = vpop.permute.xlu0 %664 }
  0xd2   : > { %1001 = vrot.lane.b32.xlu1 %v2705_v60, %s2287_s6 }
  0xd3   : > { %985 = vrot.lane.b32.xlu0 %v2717_v7, %s2287_s6 }
  0xd4   : > { %v760_v32 = vpop.permute.xlu1 %759 }
  0xd5   : > { %v2823_v40 = vpop.permute.xlu0 %743 }
  0xd6   : > { %686 = vrot.lane.b32.xlu1 %v2685_v26, %s2282_s10 }
  0xd7   : > { %670 = vrot.lane.b32.xlu0 %v2689_v28, %s2282_s10 }
  0xd8   : > { %v2830_v49 = vpop.permute.xlu1 %761 }
  0xd9   : > { %v2833_v41 = vpop.permute.xlu0 %745 }
  0xda   : > { %1003 = vrot.lane.b32.xlu1 %v738_v59, %s2287_s6 }
  0xdb   : > { %987 = vrot.lane.b32.xlu0 %v714_v27, %s2287_s6 }
  0xdc   : > { %v797_v35 = vpop.permute.xlu1 %796 }
  0xdd   : > { %v781_v6 = vpop.permute.xlu0 %780 }
  0xde   : > { %688 = vrot.lane.b32.xlu1 %v657_v62, %s2282_s10 }
  0xdf   : > { %672 = vrot.lane.b32.xlu0 %v561_v5, %s2282_s10 }
  0xe0   : > { %v2839_v26 = vpop.permute.xlu1 %798 }
  0xe1   : > { %v2841_v28 = vpop.permute.xlu0 %782 }
  0xe2   : > { %767 = vrot.lane.b32.xlu1 %v2705_v60, %s2281_s9  ;;  %v812_v60 = vshrl.u32 %v2196_v53, 16 }
  0xe3   : > { %751 = vrot.lane.b32.xlu0 %v2717_v7, %s2281_s9 }
  0xe4   : > { %v844_v0 = vpop.permute.xlu1 %843  ;;  %v817_v38 = vor.u32 %v816_v34, %v812_v60  ;;  %v2200_v60 = vld [vmem:[%s2378_s7 + $0x60] sm:$0xff]  }
  0xe5   : > { %v828_v52 = vpop.permute.xlu0 %827 }
  0xe6   : > { %769 = vrot.lane.b32.xlu1 %v738_v59, %s2281_s9  ;;  %v2868_v54 = vsel %vm465_vm1, %v817_v38, %v821_v8 }
  0xe7   : > { %753 = vrot.lane.b32.xlu0 %v714_v27, %s2281_s9 }
  0xe8   : > { %v2851_v63 = vpop.permute.xlu1 %845 }
  0xe9   : > { %v2853_v4 = vpop.permute.xlu0 %829 }
  0xea   : > { %804 = vrot.lane.b32.xlu1 %v2708_v3, %s2280_s8 }
  0xeb   : > { %788 = vrot.lane.b32.xlu0 %v2720_v45, %s2280_s8 }
  0xec   : > { %v879_v7 = vpop.permute.xlu1 %878 }
  0xed   : > { %v863_v47 = vpop.permute.xlu0 %862 }
  0xee   : > { %806 = vrot.lane.b32.xlu1 %v2196_v53, %s2280_s8 }
  0xef   : > { %790 = vrot.lane.b32.xlu0 %v2391_v2, %s2280_s8  ;;  %v856_v2 = vrot.slane %v2197_v18, 1  ;;  %v935_v18 = vrot.slane %v933_v30, 1  ;;  %v975_v30 = vrot.slane %v2892_v25, 1  ;;  %s250_s8 = sand.u32 1, %s2262_s16  }
  0xf0   : > { %v2862_v16 = vpop.permute.xlu1 %880  ;;  %s1806_s9 = sshll.u32 %s250_s8, 7 }
  0xf1   : > { %v2864_v17 = vpop.permute.xlu0 %864  ;;  %v936_v8 = vor.u32 %v935_v18, %v931_v46 }
  0xf2   : > { %851 = vrot.lane.b32.xlu1 %v657_v62, %s2283_s11  ;;  %v2879_v62 = vsel %vm690_vm0, %v855_v22, %v856_v2 }
  0xf3   : > { %835 = vrot.lane.b32.xlu0 %v561_v5, %s2283_s11  ;;  %v1031_v5 = vsel %vm1009_vm3, %v2426_v39, %v2777_v1  ;;  %v1048_v1 = vsel %vm1042_vm4, %v1015_v37, %v2823_v40 }
  0xf4   : > { %v916_v20 = vpop.permute.xlu1 %915  ;;  %v1064_v36 = vsel %vm1042_vm4, %v1031_v5, %v760_v32  ;;  %v1081_v33 = vsel %vm1075_vm6, %v1048_v1, %v781_v6 }
  0xf5   : > { %v900_v42 = vpop.permute.xlu0 %899  ;;  %v1097_v10 = vsel %vm1075_vm6, %v1064_v36, %v797_v35  ;;  %v1114_v19 = vsel %vm1108_vm5, %v1081_v33, %v828_v52  ;;  %v1033_v52 = vsel %vm1009_vm3, %v2477_v11, %v2811_v15  ;;  %v2201_v15 = vld [vmem:[%s2378_s7 + $0x6c] sm:$0xff]  }
  0xf6   : > { %853 = vrot.lane.b32.xlu1 %v2868_v54, %s2283_s11  ;;  %v1130_v32 = vsel %vm1108_vm5, %v1097_v10, %v844_v0  ;;  %v1147_v40 = vsel %vm1141_vm7, %v1114_v19, %v863_v47  ;;  %v1066_v47 = vsel %vm1042_vm4, %v1033_v52, %v2830_v49 }
  0xf7   : > { %837 = vrot.lane.b32.xlu0 %v2442_v51, %s2283_s11  ;;  %v1099_v11 = vsel %vm1075_vm6, %v1066_v47, %v2839_v26  ;;  %s3070_s11 = scalar_lea.vmem [#allocation2], %s1806_s9 }
  0xf8   : > { %v918_v55 = vpop.permute.xlu1 %917  ;;  %v1132_v2 = vsel %vm1108_vm5, %v1099_v11, %v2851_v63 }
  0xf9   : > { %v2875_v21 = vpop.permute.xlu0 %901 }
  0xfa   : > { %886 = vrot.lane.b32.xlu1 %v738_v59, %s2284_s12  ;;  %v1163_v59 = vsel %vm1141_vm7, %v1130_v32, %v879_v7 }
  0xfb   : > { %870 = vrot.lane.b32.xlu0 %v714_v27, %s2284_s12  ;;  %v1196_v35 = vsel %vm1174_vm8, %v1163_v59, %v916_v20  ;;  %v940_v20 = vrot.slane %v938_v29, 1 }
  0xfc   : > { %v963_v24 = vpop.permute.xlu1 %962 }
  0xfd   : > { %v947_v31 = vpop.permute.xlu0 %946  ;;  %v1229_v0 = vsel %vm1207_vm9, %v1196_v35, %v963_v24 }
  0xfe   : > { %888 = vrot.lane.b32.xlu1 %v2879_v62, %s2284_s12 }
  0xff   : > { %872 = vrot.lane.b32.xlu0 %v2404_v12, %s2284_s12  ;;  %s1934_s12 = sshll.u32 %s2270_s18, 11  ;;  %s3123_s18 = scalar_lea.sflag [#allocation3], %s250_s8 }
 0x100   : > { %v965_v39 = vpop.permute.xlu1 %964  ;;  %s3114_s5 = scalar_lea.hbm %s3173_s4, %s1934_s12 }
 0x101   : > { %v949_v27 = vpop.permute.xlu0 %948 }
 0x102   : > { %923 = vrot.lane.b32.xlu1 %v2196_v53, %s2285_s13  ;;  %v1180_v53 = vsel %vm1174_vm8, %v1147_v40, %v900_v42  ;;  %v1017_v42 = vsel %vm1009_vm3, %v2484_v14, %v2813_v61  ;;  %v1165_v14 = vsel %vm1141_vm7, %v1132_v2, %v2862_v16 }
 0x103   : > { %907 = vrot.lane.b32.xlu0 %v2200_v60, %s2285_s13  ;;  %v1213_v50 = vsel %vm1207_vm9, %v1180_v53, %v947_v31  ;;  %v1050_v49 = vsel %vm1042_vm4, %v1017_v42, %v2833_v41  ;;  %v1198_v5 = vsel %vm1174_vm8, %v1165_v14, %v918_v55  ;;  %v941_v41 = vsel %vm465_vm1, %v936_v8, %v940_v20 }
 0x104   : > { %v998_v6 = vpop.permute.xlu1 %997  ;;  %v1083_v24 = vsel %vm1075_vm6, %v1050_v49, %v2841_v28  ;;  %v1231_v31 = vsel %vm1207_vm9, %v1198_v5, %v965_v39  ;;  %v974_v55 = vrot.slane %v2882_v57, 1 }
 0x105   : > { %v1262_v34 = vsel %vm1240_vm10, %v1229_v0, %v998_v6  ;;  %v982_v7 = vpop.permute.xlu0 %981  ;;  %v1116_v26 = vsel %vm1108_vm5, %v1083_v24, %v2853_v4 }
 0x106   : > { %925 = vrot.lane.b32.xlu1 %v2882_v57, %s2285_s13  ;;  %2075 = vmatprep.mubr.msk.bf16.mxu1 %vm1300_vm11, %v1262_v34  ;;  %v1246_v38 = vsel %vm1240_vm10, %v1213_v50, %v982_v7  ;;  %v1149_v63 = vsel %vm1141_vm7, %v1116_v26, %v2864_v17  ;;  %v976_v37 = vsel %vm690_vm0, %v974_v55, %v975_v30 }
 0x107   : > { %909 = vrot.lane.b32.xlu0 %v2201_v15, %s2285_s13  ;;  %2059 = vmatprep.mubr.msk.bf16.mxu0 %vm1300_vm11, %v1246_v38  ;;  %v1182_v16 = vsel %vm1174_vm8, %v1149_v63, %v2875_v21  ;;  %s1707_s13 = sshll.u32 %s3070_s11, 4  ;;  %s3118_s13 = int_to_ptr.vmem [resolvable:$true] %s1707_s13 }
 0x108   : > { %v683_v22 = vpop.permute.xlu1 %682  ;;  %v1215_v4 = vsel %vm1207_vm9, %v1182_v16, %v949_v27  ;;  %p2209_p1 = scmp.lt.s32.totalorder %s3118_s13, %s2207_s21 }
 0x109   : > { %v667_v61 = vpop.permute.xlu0 %666 }
 0x10a   : > { %970 = vrot.lane.b32.xlu1 %v2868_v54, %s2286_s26  ;;  %v1019_v52 = vsel %vm1009_vm3, %v2545_v44, %v667_v61 }
 0x10b   : > { %954 = vrot.lane.b32.xlu0 %v2442_v51, %s2286_s26 }
 0x10c   : > { %v1000_v28 = vpop.permute.xlu1 %999 }
 0x10d   : > { %v1264_v54 = vsel %vm1240_vm10, %v1231_v31, %v1000_v28  ;;  %v984_v36 = vpop.permute.xlu0 %983 }
 0x10e   : > { %972 = vrot.lane.b32.xlu1 %v941_v41, %s2286_s26  ;;  %2076 = vmatmul.mubr.msk.bf16.gmra.mxu1 %vm1300_vm11, %v1264_v54  ;;  %v1248_v17 = vsel %vm1240_vm10, %v1215_v4, %v984_v36 }
 0x10f   : > { %956 = vrot.lane.b32.xlu0 %v2437_v48, %s2286_s26  ;;  %2060 = vmatmul.mubr.msk.bf16.gmra.mxu0 %vm1300_vm11, %v1248_v17 }
 0x110   : > { %v685_v51 = vpop.permute.xlu1 %684 }
 0x111   : > { %v669_v21 = vpop.permute.xlu0 %668  ;;  %v1037_v24 = vsel %vm1009_vm3, %v2580_v9, %v685_v51 }
 0x112   : > { %1005 = vrot.lane.b32.xlu1 %v2879_v62, %s2287_s6  ;;  %v1021_v41 = vsel %vm1009_vm3, %v2585_v13, %v669_v21 }
 0x113   : > { %989 = vrot.lane.b32.xlu0 %v2404_v12, %s2287_s6 }
 0x114   : > { %v764_v10 = vpop.permute.xlu1 %763 }
 0x115   : > { %v748_v39 = vpop.permute.xlu0 %747 }
 0x116   : > { %1007 = vrot.lane.b32.xlu1 %v976_v37, %s2287_s6  ;;  %v1052_v47 = vsel %vm1042_vm4, %v1019_v52, %v748_v39 }
 0x117   : > { %991 = vrot.lane.b32.xlu0 %v2416_v23, %s2287_s6  ;;  %v1035_v23 = vsel %vm1009_vm3, %v2540_v43, %v683_v22  ;;  %s2202_s6 = scalar_lea.vmem %s3118_s13, 2048 }
 0x118   : > { %v766_v48 = vpop.permute.xlu1 %765  ;;  %v1068_v34 = vsel %vm1042_vm4, %v1035_v23, %v764_v10  ;;  %p2203_p12 = scmp.ne.s32.totalorder %s3118_s13, %s2202_s6  ;;  %p2210_p2 = scmp.lt.s32.totalorder %s2208_s22, %s2202_s6 }
 0x119   : > { %v750_v57 = vpop.permute.xlu0 %749  ;;  %v1070_v26 = vsel %vm1042_vm4, %v1037_v24, %v766_v48 }
 0x11a   : > { %v1054_v28 = vsel %vm1042_vm4, %v1021_v41, %v750_v57  ;;  %p2204_p13 = pnand %p2203_p12, %p2355_p4  ;;  %p2211_p3 = por %p2210_p2, %p2209_p1 }
 0x11c   : > { %v801_v25 = vpop.permute.xlu1 %800  ;;  %p2205_p0 = pneg %p2204_p13 }
 0x11d   : > { %v785_v1 = vpop.permute.xlu0 %784  ;;  %v1101_v50 = vsel %vm1075_vm6, %v1068_v34, %v801_v25 }
 0x11e   : > { %v1085_v8 = vsel %vm1075_vm6, %v1052_v47, %v785_v1  ;;  %p2212_p5 = pnand %p2211_p3, %p2205_p0 }
 0x120   : > { %v803_v32 = vpop.permute.xlu1 %802 }
 0x121   : > { %v787_v33 = vpop.permute.xlu0 %786  ;;  %v1103_v63 = vsel %vm1075_vm6, %v1070_v26, %v803_v32 }
 0x122   : > { %v1087_v16 = vsel %vm1075_vm6, %v1054_v28, %v787_v33 }
 0x124   : > { %v848_v59 = vpop.permute.xlu1 %847 }
 0x125   : > { %v832_v62 = vpop.permute.xlu0 %831  ;;  %v1134_v38 = vsel %vm1108_vm5, %v1101_v50, %v848_v59 }
 0x126   : > { %v1118_v43 = vsel %vm1108_vm5, %v1085_v8, %v832_v62 }
 0x128   : > { %v850_v27 = vpop.permute.xlu1 %849 }
 0x129   : > { %v834_v46 = vpop.permute.xlu0 %833  ;;  %v1136_v9 = vsel %vm1108_vm5, %v1103_v63, %v850_v27 }
 0x12a   : > { %v1120_v36 = vsel %vm1108_vm5, %v1087_v16, %v834_v46 }
 0x12c   : > { %v883_v19 = vpop.permute.xlu1 %882 }
 0x12d   : > { %v867_v35 = vpop.permute.xlu0 %866  ;;  %v1167_v20 = vsel %vm1141_vm7, %v1134_v38, %v883_v19 }
 0x12e   : > { %v1151_v15 = vsel %vm1141_vm7, %v1118_v43, %v867_v35 }
 0x130   : > { %v885_v12 = vpop.permute.xlu1 %884 }
 0x131   : > { %v869_v18 = vpop.permute.xlu0 %868  ;;  %v1169_v54 = vsel %vm1141_vm7, %v1136_v9, %v885_v12 }
 0x132   : > { %v1153_v13 = vsel %vm1141_vm7, %v1120_v36, %v869_v18 }
 0x134   : > { %v920_v29 = vpop.permute.xlu1 %919 }
 0x135   : > { %v904_v40 = vpop.permute.xlu0 %903  ;;  %v1200_v11 = vsel %vm1174_vm8, %v1167_v20, %v920_v29 }
 0x136   : > { %v1184_v49 = vsel %vm1174_vm8, %v1151_v15, %v904_v40 }
 0x138   : > { %v922_v0 = vpop.permute.xlu1 %921 }
 0x139   : > { %v906_v60 = vpop.permute.xlu0 %905  ;;  %v1202_v17 = vsel %vm1174_vm8, %v1169_v54, %v922_v0 }
 0x13a   : > { %v1186_v51 = vsel %vm1174_vm8, %v1153_v13, %v906_v60 }
 0x13c   : > { %v967_v6 = vpop.permute.xlu1 %966 }
 0x13d   : > { %v951_v53 = vpop.permute.xlu0 %950  ;;  %v1233_v44 = vsel %vm1207_vm9, %v1200_v11, %v967_v6 }
 0x13e   : > { %v1217_v14 = vsel %vm1207_vm9, %v1184_v49, %v951_v53 }
 0x140   : > { %v969_v7 = vpop.permute.xlu1 %968 }
 0x141   : > { %v953_v42 = vpop.permute.xlu0 %952  ;;  %v1235_v55 = vsel %vm1207_vm9, %v1202_v17, %v969_v7 }
 0x142   : > { %v1219_v37 = vsel %vm1207_vm9, %v1186_v51, %v953_v42 }
 0x144   : > { %v1002_v22 = vpop.permute.xlu1 %1001 }
 0x145   : > { %v1266_v2 = vsel %vm1240_vm10, %v1233_v44, %v1002_v22  ;;  %v986_v61 = vpop.permute.xlu0 %985 }
 0x146   : > { %2079 = vmatprep.mubr.msk.bf16.mxu1 %vm1300_vm11, %v1266_v2  ;;  %v1250_v5 = vsel %vm1240_vm10, %v1217_v14, %v986_v61 }
 0x147   : > { %2063 = vmatprep.mubr.msk.bf16.mxu0 %vm1300_vm11, %v1250_v5 }
 0x148   : > { %v687_v31 = vpop.permute.xlu1 %686 }
 0x149   : > { %v671_v4 = vpop.permute.xlu0 %670  ;;  %v1039_v50 = vsel %vm1009_vm3, %v2646_v56, %v687_v31 }
 0x14a   : > { %v1023_v38 = vsel %vm1009_vm3, %v2652_v58, %v671_v4 }
 0x14c   : > { %v1004_v30 = vpop.permute.xlu1 %1003 }
 0x14d   : > { %v1268_v21 = vsel %vm1240_vm10, %v1235_v55, %v1004_v30  ;;  %v988_v10 = vpop.permute.xlu0 %987 }
 0x14e   : > { %2080 = vmatmul.mubr.msk.bf16.gmra.mxu1 %vm1300_vm11, %v1268_v21  ;;  %v1252_v39 = vsel %vm1240_vm10, %v1219_v37, %v988_v10  ;;  %v3057_v10 = vld [vmem:[%s3172_s3] ss:$0 sm:$0xff] }
 0x14f   : > { %2064 = vmatmul.mubr.msk.bf16.gmra.mxu0 %vm1300_vm11, %v1252_v39 }
 0x150   : > { %v689_v48 = vpop.permute.xlu1 %688 }
 0x151   : > { %v673_v57 = vpop.permute.xlu0 %672  ;;  %v1041_v11 = vsel %vm1009_vm3, %v2708_v3, %v689_v48 }
 0x152   : > { %v1025_v2 = vsel %vm1009_vm3, %v2720_v45, %v673_v57 }
 0x154   : > { %v768_v25 = vpop.permute.xlu1 %767 }
 0x155   : > { %v752_v1 = vpop.permute.xlu0 %751  ;;  %v1072_v47 = vsel %vm1042_vm4, %v1039_v50, %v768_v25 }
 0x156   : > { %v1056_v42 = vsel %vm1042_vm4, %v1023_v38, %v752_v1 }
 0x158   : > { %v770_v32 = vpop.permute.xlu1 %769 }
 0x159   : > { %v754_v33 = vpop.permute.xlu0 %753  ;;  %v1074_v22 = vsel %vm1042_vm4, %v1041_v11, %v770_v32 }
 0x15a   : > { %v1058_v26 = vsel %vm1042_vm4, %v1025_v2, %v754_v33 }
 0x15c   : > { %v805_v59 = vpop.permute.xlu1 %804 }
 0x15d   : > { %v789_v62 = vpop.permute.xlu0 %788  ;;  %v1105_v8 = vsel %vm1075_vm6, %v1072_v47, %v805_v59 }
 0x15e   : > { %v1089_v15 = vsel %vm1075_vm6, %v1056_v42, %v789_v62 }
 0x160   : > { %v807_v27 = vpop.permute.xlu1 %806 }
 0x161   : > { %v791_v46 = vpop.permute.xlu0 %790  ;;  %v1107_v24 = vsel %vm1075_vm6, %v1074_v22, %v807_v27 }
 0x162   : > { %v1091_v31 = vsel %vm1075_vm6, %v1058_v26, %v791_v46 }
 0x164   : > { %v852_v19 = vpop.permute.xlu1 %851 }
 0x165   : > { %v836_v35 = vpop.permute.xlu0 %835  ;;  %v1138_v43 = vsel %vm1108_vm5, %v1105_v8, %v852_v19 }
 0x166   : > { %v1122_v49 = vsel %vm1108_vm5, %v1089_v15, %v836_v35 }
 0x168   : > { %v854_v12 = vpop.permute.xlu1 %853 }
 0x169   : > { %v838_v18 = vpop.permute.xlu0 %837  ;;  %v1140_v5 = vsel %vm1108_vm5, %v1107_v24, %v854_v12 }
 0x16a   : > { %v1124_v16 = vsel %vm1108_vm5, %v1091_v31, %v838_v18 }
 0x16c   : > { %v887_v29 = vpop.permute.xlu1 %886 }
 0x16d   : > { %v871_v40 = vpop.permute.xlu0 %870  ;;  %v1171_v56 = vsel %vm1141_vm7, %v1138_v43, %v887_v29 }
 0x16e   : > { %v1155_v14 = vsel %vm1141_vm7, %v1122_v49, %v871_v40 }
 0x170   : > { %v889_v0 = vpop.permute.xlu1 %888 }
 0x171   : > { %v873_v60 = vpop.permute.xlu0 %872  ;;  %v1173_v28 = vsel %vm1141_vm7, %v1140_v5, %v889_v0 }
 0x172   : > { %v1157_v36 = vsel %vm1141_vm7, %v1124_v16, %v873_v60 }
 0x174   : > { %v924_v6 = vpop.permute.xlu1 %923 }
 0x175   : > { %v908_v23 = vpop.permute.xlu0 %907  ;;  %v1204_v58 = vsel %vm1174_vm8, %v1171_v56, %v924_v6 }
 0x176   : > { %v1188_v41 = vsel %vm1174_vm8, %v1155_v14, %v908_v23 }
 0x178   : > { %v926_v53 = vpop.permute.xlu1 %925 }
 0x179   : > { %v910_v34 = vpop.permute.xlu0 %909  ;;  %v1206_v54 = vsel %vm1174_vm8, %v1173_v28, %v926_v53 }
 0x17a   : > { %v1190_v55 = vsel %vm1174_vm8, %v1157_v36, %v910_v34 }
 0x17c   : > { %v971_v52 = vpop.permute.xlu1 %970 }
 0x17d   : > { %v955_v7 = vpop.permute.xlu0 %954  ;;  %v1237_v3 = vsel %vm1207_vm9, %v1204_v58, %v971_v52 }
 0x17e   : > { %v1221_v45 = vsel %vm1207_vm9, %v1188_v41, %v955_v7 }
 0x180   : > { %v973_v20 = vpop.permute.xlu1 %972 }
 0x181   : > { %v957_v44 = vpop.permute.xlu0 %956  ;;  %v1239_v17 = vsel %vm1207_vm9, %v1206_v54, %v973_v20 }
 0x182   : > { %v1223_v51 = vsel %vm1207_vm9, %v1190_v55, %v957_v44 }
 0x184   : > { %v1006_v61 = vpop.permute.xlu1 %1005 }
 0x185   : > { %v1270_v63 = vsel %vm1240_vm10, %v1237_v3, %v1006_v61  ;;  %v990_v9 = vpop.permute.xlu0 %989 }
 0x186   : > { %2083 = vmatprep.mubr.msk.bf16.mxu1 %vm1300_vm11, %v1270_v63  ;;  %v1254_v4 = vsel %vm1240_vm10, %v1221_v45, %v990_v9 }
 0x187   : > { %2067 = vmatprep.mubr.msk.bf16.mxu0 %vm1300_vm11, %v1254_v4 }
 0x188   : > { %v1008_v13 = vpop.permute.xlu1 %1007 }
 0x189   : > { %v1272_v30 = vsel %vm1240_vm10, %v1239_v17, %v1008_v13  ;;  %v992_v21 = vpop.permute.xlu0 %991 }
 0x18a   : > { %2084 = vmatmul.mubr.msk.bf16.gmra.mxu1 %vm1300_vm11, %v1272_v30  ;;  %v1256_v37 = vsel %vm1240_vm10, %v1223_v51, %v992_v21 }
 0x18b   : > { %2068 = vmatmul.mubr.msk.bf16.gmra.mxu0 %vm1300_vm11, %v1256_v37 }
 0x18e   : > { %v2073_v39 = vpop.f32.mrf.mxu1 }
 0x18f   : > { %v2057_v48 = vpop.f32.mrf.mxu0  ;;  %v1444_v57 = vadd.f32 %v2073_v39, %v3057_v10 }
 0x190   : > { %v1435_v25 = vpop.f32.mrf.mxu1  ;;  %v1380_v1 = vadd.f32 %v2057_v48, %v3057_v10 }
 0x191   : > { %v1371_v32 = vpop.f32.mrf.mxu0  ;;  %v1436_v33 = vadd.f32 %v3057_v10, %v1435_v25  ;;  %v1516_v27 = vmax.f32 %v1444_v57, 0.0 }
 0x192   : > { %v2074_v59 = vpop.f32.mrf.mxu1  ;;  %v1372_v35 = vadd.f32 %v3057_v10, %v1371_v32  ;;  %v1500_v40 = vmax.f32 %v1380_v1, 0.0 }
 0x193   : > { %v1447_v62 = vadd.f32 %v2074_v59, %v3057_v10  ;;  %v2058_v46 = vpop.f32.mrf.mxu0  ;;  %v1514_v0 = vmax.f32 %v1436_v33, 0.0 }
 0x194   : > { %v1438_v19 = vpop.f32.mrf.mxu1  ;;  %v1383_v12 = vadd.f32 %v2058_v46, %v3057_v10  ;;  %v1498_v52 = vmax.f32 %v1372_v35, 0.0 }
 0x195   : > { %v1517_v18 = vmax.f32 %v1447_v62, 0.0  ;;  %v1439_v29 = vadd.f32 %v3057_v10, %v1438_v19  ;;  %v1374_v60 = vpop.f32.mrf.mxu0 }
 0x196   : > { %v1501_v6 = vmax.f32 %v1383_v12, 0.0  ;;  %v1375_v53 = vadd.f32 %v3057_v10, %v1374_v60 }
 0x197   : > { %v1983_v23 = vpack.c.bf16 %v1517_v18, %v1516_v27  ;;  %v1515_v34 = vmax.f32 %v1439_v29, 0.0 }
 0x198   : > { %v1943_v50 = vpack.c.bf16 %v1501_v6, %v1500_v40  ;;  %v1499_v7 = vmax.f32 %v1375_v53, 0.0 }
 0x199   : > { %2023 = vst [vmem:[%s3070_s11 + $0x48] sm:$0xff] %v1983_v23   ;;  %v1978_v47 = vpack.c.bf16 %v1515_v34, %v1514_v0 }
 0x19a   : > { %2015 = vst [vmem:[%s3070_s11 + $0x8] sm:$0xff] %v1943_v50   ;;  %v1938_v38 = vpack.c.bf16 %v1499_v7, %v1498_v52 }
 0x19b   : > { %2022 = vst [vmem:[%s3070_s11 + $0x40] sm:$0xff] %v1978_v47  }
 0x19c   : > { %1939 = vst [vmem:[%s3070_s11] sm:$0xff] %v1938_v38  }
 0x1ce   : > { %v2077_v8 = vpop.f32.mrf.mxu1 }
 0x1cf   : > { %v2061_v20 = vpop.f32.mrf.mxu0  ;;  %v1460_v42 = vadd.f32 %v2077_v8, %v3057_v10 }
 0x1d0   : > { %v1451_v43 = vpop.f32.mrf.mxu1  ;;  %v1396_v11 = vadd.f32 %v2061_v20, %v3057_v10 }
 0x1d1   : > { %v1387_v15 = vpop.f32.mrf.mxu0  ;;  %v1452_v56 = vadd.f32 %v3057_v10, %v1451_v43  ;;  %v1520_v49 = vmax.f32 %v1460_v42, 0.0 }
 0x1d2   : > { %v2078_v44 = vpop.f32.mrf.mxu1  ;;  %v1388_v24 = vadd.f32 %v3057_v10, %v1387_v15  ;;  %v1504_v26 = vmax.f32 %v1396_v11, 0.0 }
 0x1d3   : > { %v1463_v22 = vadd.f32 %v2078_v44, %v3057_v10  ;;  %v2062_v58 = vpop.f32.mrf.mxu0  ;;  %v1518_v5 = vmax.f32 %v1452_v56, 0.0 }
 0x1d4   : > { %v1454_v2 = vpop.f32.mrf.mxu1  ;;  %v1399_v14 = vadd.f32 %v2062_v58, %v3057_v10  ;;  %v1502_v9 = vmax.f32 %v1388_v24, 0.0 }
 0x1d5   : > { %v1521_v3 = vmax.f32 %v1463_v22, 0.0  ;;  %v1455_v61 = vadd.f32 %v3057_v10, %v1454_v2  ;;  %v1390_v41 = vpop.f32.mrf.mxu0 }
 0x1d6   : > { %v1505_v63 = vmax.f32 %v1399_v14, 0.0  ;;  %v1391_v28 = vadd.f32 %v3057_v10, %v1390_v41 }
 0x1d7   : > { %v1993_v31 = vpack.c.bf16 %v1521_v3, %v1520_v49  ;;  %v1519_v45 = vmax.f32 %v1455_v61, 0.0 }
 0x1d8   : > { %v1953_v16 = vpack.c.bf16 %v1505_v63, %v1504_v26  ;;  %v1503_v54 = vmax.f32 %v1391_v28, 0.0 }
 0x1d9   : > { %2025 = vst [vmem:[%s3070_s11 + $0x58] sm:$0xff] %v1993_v31   ;;  %v1988_v4 = vpack.c.bf16 %v1519_v45, %v1518_v5 }
 0x1da   : > { %2017 = vst [vmem:[%s3070_s11 + $0x18] sm:$0xff] %v1953_v16   ;;  %v1948_v36 = vpack.c.bf16 %v1503_v54, %v1502_v9 }
 0x1db   : > { %2024 = vst [vmem:[%s3070_s11 + $0x50] sm:$0xff] %v1988_v4  }
 0x1dc   : > { %2016 = vst [vmem:[%s3070_s11 + $0x10] sm:$0xff] %v1948_v36  }
 0x20e   : > { %v2081_v17 = vpop.f32.mrf.mxu1 }
 0x20f   : > { %v2065_v13 = vpop.f32.mrf.mxu0  ;;  %v1476_v55 = vadd.f32 %v2081_v17, %v3057_v10 }
 0x210   : > { %v1467_v30 = vpop.f32.mrf.mxu1  ;;  %v1412_v51 = vadd.f32 %v2065_v13, %v3057_v10 }
 0x211   : > { %v1403_v21 = vpop.f32.mrf.mxu0  ;;  %v1468_v37 = vadd.f32 %v3057_v10, %v1467_v30  ;;  %v1524_v57 = vmax.f32 %v1476_v55, 0.0 }
 0x212   : > { %v2082_v39 = vpop.f32.mrf.mxu1  ;;  %v1404_v32 = vadd.f32 %v3057_v10, %v1403_v21  ;;  %v1508_v27 = vmax.f32 %v1412_v51, 0.0 }
 0x213   : > { %v1479_v48 = vadd.f32 %v2082_v39, %v3057_v10  ;;  %v2066_v25 = vpop.f32.mrf.mxu0  ;;  %v1522_v46 = vmax.f32 %v1468_v37, 0.0 }
 0x214   : > { %v1470_v1 = vpop.f32.mrf.mxu1  ;;  %v1415_v33 = vadd.f32 %v2066_v25, %v3057_v10  ;;  %v1506_v40 = vmax.f32 %v1404_v32, 0.0 }
 0x215   : > { %v1525_v59 = vmax.f32 %v1479_v48, 0.0  ;;  %v1471_v62 = vadd.f32 %v3057_v10, %v1470_v1  ;;  %v1406_v19 = vpop.f32.mrf.mxu0 }
 0x216   : > { %v1509_v35 = vmax.f32 %v1415_v33, 0.0  ;;  %v1407_v18 = vadd.f32 %v3057_v10, %v1406_v19 }
 0x217   : > { %v2003_v12 = vpack.c.bf16 %v1525_v59, %v1524_v57  ;;  %v1523_v29 = vmax.f32 %v1471_v62, 0.0 }
 0x218   : > { %v1963_v0 = vpack.c.bf16 %v1509_v35, %v1508_v27  ;;  %v1507_v60 = vmax.f32 %v1407_v18, 0.0 }
 0x219   : > { %2027 = vst [vmem:[%s3070_s11 + $0x68] sm:$0xff] %v2003_v12   ;;  %v1998_v6 = vpack.c.bf16 %v1523_v29, %v1522_v46 }
 0x21a   : > { %2019 = vst [vmem:[%s3070_s11 + $0x28] sm:$0xff] %v1963_v0   ;;  %v1958_v23 = vpack.c.bf16 %v1507_v60, %v1506_v40 }
 0x21b   : > { %2026 = vst [vmem:[%s3070_s11 + $0x60] sm:$0xff] %v1998_v6  }
 0x21c   : > { %2018 = vst [vmem:[%s3070_s11 + $0x20] sm:$0xff] %v1958_v23  }
 0x24a   : > { %v2085_v53 = vpop.f32.mrf.mxu1 }
 0x24b   : > { %v2069_v34 = vpop.f32.mrf.mxu0  ;;  %v1492_v52 = vadd.f32 %v2085_v53, %v3057_v10 }
 0x24c   : > { %v1483_v50 = vpop.f32.mrf.mxu1  ;;  %v1428_v7 = vadd.f32 %v2069_v34, %v3057_v10 }
 0x24d   : > { %v1419_v47 = vpop.f32.mrf.mxu0  ;;  %v1484_v38 = vadd.f32 %v3057_v10, %v1483_v50  ;;  %v1528_v42 = vmax.f32 %v1492_v52, 0.0 }
 0x24e   : > { %v2086_v8 = vpop.f32.mrf.mxu1  ;;  %v1420_v15 = vadd.f32 %v3057_v10, %v1419_v47  ;;  %v1512_v49 = vmax.f32 %v1428_v7, 0.0 }
 0x24f   : > { %v1495_v20 = vadd.f32 %v2086_v8, %v3057_v10  ;;  %v2070_v43 = vpop.f32.mrf.mxu0  ;;  %v1526_v58 = vmax.f32 %v1484_v38, 0.0 }
 0x250   : > { %v1486_v11 = vpop.f32.mrf.mxu1  ;;  %v1431_v56 = vadd.f32 %v2070_v43, %v3057_v10  ;;  %v1510_v26 = vmax.f32 %v1420_v15, 0.0 }
 0x251   : > { %v1529_v44 = vmax.f32 %v1495_v20, 0.0  ;;  %v1487_v22 = vadd.f32 %v3057_v10, %v1486_v11  ;;  %v1422_v2 = vpop.f32.mrf.mxu0 }
 0x252   : > { %v1513_v24 = vmax.f32 %v1431_v56, 0.0  ;;  %v1423_v3 = vadd.f32 %v3057_v10, %v1422_v2 }
 0x253   : > { %v2013_v14 = vpack.c.bf16 %v1529_v44, %v1528_v42  ;;  %v1527_v61 = vmax.f32 %v1487_v22, 0.0 }
 0x254   : > { %v1973_v5 = vpack.c.bf16 %v1513_v24, %v1512_v49  ;;  %v1511_v41 = vmax.f32 %v1423_v3, 0.0 }
 0x255   : > { %2029 = vst [vmem:[%s3070_s11 + $0x78] sm:$0xff] %v2013_v14   ;;  %v2008_v63 = vpack.c.bf16 %v1527_v61, %v1526_v58 }
 0x256   : > { %2021 = vst [vmem:[%s3070_s11 + $0x38] sm:$0xff] %v1973_v5   ;;  %v1968_v31 = vpack.c.bf16 %v1511_v41, %v1510_v26 }
 0x257   : > { %2028 = vst [vmem:[%s3070_s11 + $0x70] sm:$0xff] %v2008_v63  }
 0x258   : > { %2020 = vst [vmem:[%s3070_s11 + $0x30] sm:$0xff] %v1968_v31  }
 0x259   : > { %2215 = shalt.err (!%p2212_p5)
}
 0x25a   : > { %s2216_s24 = scalar_lea.hbm %s3114_s5, 2048  ;;  %s2220_s8 = scalar_lea.hbm %s3173_s4, 4096 }
 0x25b   : > { %p2217_p6 = scmp.ne.s32.totalorder %s3114_s5, %s2216_s24  ;;  %p2221_p10 = scmp.lt.s32.totalorder %s3114_s5, %s3173_s4 }
 0x25c   : > { %p2222_p11 = scmp.lt.s32.totalorder %s2220_s8, %s2216_s24 }
 0x25d   : > { %p2218_p7 = pnand %p2217_p6, %p2355_p4 }
 0x25e   : > { %p2223_p12 = por %p2222_p11, %p2221_p10 }
 0x25f   : > { %p2219_p9 = pneg %p2218_p7 }
 0x261   : > { %p2224_p13 = pnand %p2223_p12, %p2219_p9 }
 0x263   : > { %2227 = shalt.err (!%p2224_p13)
}
 0x264   : > { %s2289_s12 = smov 64  }
 0x265   : > { %2097 = dma.vmem_to_hbm [thread:$0]  (%p2355_p4), %s3118_s13, 2048, %s3114_s5, %s3123_s18, %s2289_s12, %s2289_s12, %s2282_s10  }
 0x266 PF: > { %p2103_p0 = scmp.ge.s32.totalorder %s2278_s20, 2  ;;  %s1722_s26 = sand.u32 1, %s2258_s15  }
 0x267   : > { %s1723_s30 = scalar_lea.sflag [#allocation3], %s1722_s26 }
 0x268   : > { %p2100_p1 = pnand %p2103_p0, %p2362_p8 }
 0x26a   : > { %p2101_p2 = pneg %p2100_p1 }
 0x26c   : > { %2253 = dma.done.wait (%p2101_p2), %s1723_s30, 2048  }
 0x26d   : > { %2255 = vsyncadd (%p2101_p2), %s1723_s30, 4294965248  ;;  %s17_s20 = sadd.s32 1, %s2278_s20   ;;  %s3176_s15 = smov %s2262_s16 }
 0x26e   : > { %p14_p3 = scmp.ge.s32.totalorder %s17_s20, 4   ;;  %s3177_s16 = smov %s2266_s17 }
 0x26f   : > { %s3178_s17 = smov %s2368_s28  ;;  %s3179_s18 = smov %s2274_s19 }
 0x270   : > { %s3180_s19 = smov %s3182_s23  ;;  %16 = sbr.rel (!%p14_p3) target bundleno = 4 (0x4), region = 74 }
 0x275   :  { %1728 = vsyncpa [#allocation3], 1 }
 0x276   :  { %1730 = vsyncpa [#allocation3 + $0x1], 1 }

</bundles_post_ra>
